<compile_context>
chip_gen: v5e
topology: v5e:2x2
jax: 0.10.0
libtpu: 0.0.40
codegen_flags: <defaults>
</compile_context>

<pallas_src>
import functools
import math

import jax
import jax.numpy as jnp
from jax.experimental import pallas as pl
from jax.experimental.pallas import tpu as pltpu


def _conv_bn_relu_kernel(x_ref, w_ref, shift_ref, o_ref, scratch_ref, *,
                         KH, KW, stride, TM, Wout, Cin, pack_taps):
    """One (batch, output-row-slab) grid step.

    x_ref      : (1, Hp, Wp, Cin)   compute dtype, zero padded, resident
                                    across the row-slab grid axis.
    w_ref      : pack_taps -> (KH*KW*Cin, Cout_pad)
                 else      -> (KH*KW, Cin, Cout_pad)     (BN scale pre-folded)
    shift_ref  : (1, Cout_pad)      float32 folded BN shift.
    o_ref      : (1, TM*Wout, Cout_pad) out dtype.
    scratch_ref: pack_taps -> (TM*Wout, KH*KW*Cin) compute dtype (im2col patch)
                 else      -> (TM*Wout, Cout_pad)  float32     (accumulator)
    """
    rb = pl.program_id(1)
    row0 = rb * (TM * stride)
    if (TM * stride) % 8 == 0:
        row0 = pl.multiple_of(row0, 8)

    taps = []
    tap = 0
    for dh in range(KH):
        for dw in range(KW):
            if stride == 1:
                a = x_ref[0, pl.ds(row0 + dh, TM), dw:dw + Wout, :]
            else:
                # TODO(synk): strided-load path is functional but only
                # stride==1 layers are exercised in __main__.
                a = x_ref[0, pl.ds(row0 + dh, TM, stride=stride),
                          pl.ds(dw, Wout, stride=stride), :]
            if pack_taps:
                taps.append(a)                              # (TM, Wout, Cin)
            else:
                contrib = jnp.dot(a.reshape(TM * Wout, Cin), w_ref[tap],
                                  preferred_element_type=jnp.float32)
                if tap == 0:
                    scratch_ref[...] = contrib
                else:
                    scratch_ref[...] += contrib
            tap += 1

    if pack_taps:
        # In-VMEM im2col: pack all taps into the MXU contraction dimension.
        patch = jnp.concatenate(taps, axis=-1)              # (TM, Wout, K)
        scratch_ref[...] = patch.reshape(TM * Wout, KH * KW * Cin)
        y = jnp.dot(scratch_ref[...], w_ref[...],
                    preferred_element_type=jnp.float32)
    else:
        y = scratch_ref[...]

    y = y + shift_ref[...]                                  # folded BN shift
    o_ref[0] = jnp.maximum(y, 0.0).astype(o_ref.dtype)      # ReLU + store


def basic_conv2d_nhwc(x_nhwc, weight, gamma, beta, running_mean, running_var,
                      *, stride=1, padding=1, eps=1e-3,
                      compute_dtype=jnp.bfloat16, out_dtype=None,
                      row_block=None):
    """Fused Conv2d(bias=False) + BatchNorm2d(eval) + ReLU, NHWC activations.

    x_nhwc : (N, H, W, Cin)
    weight : (Cout, Cin, KH, KW)          (PyTorch OIHW layout)
    gamma, beta, running_mean, running_var : (Cout,)
    Returns (N, Hout, Wout, Cout) in out_dtype (default: compute_dtype).
    """
    if out_dtype is None:
        out_dtype = compute_dtype
    N, H, W, Cin = x_nhwc.shape
    Cout, Cin_w, KH, KW = weight.shape
    assert Cin_w == Cin, (Cin_w, Cin)

    Hout = (H + 2 * padding - KH) // stride + 1
    Wout = (W + 2 * padding - KW) // stride + 1
    Cout_pad = ((Cout + 127) // 128) * 128      # lane-dense output stores

    # ---- row-slab tiling: TM output rows per step, TM*Wout sublane-aligned ----
    elem_c = jnp.dtype(compute_dtype).itemsize
    elem_o = jnp.dtype(out_dtype).itemsize
    sub = max(8, 32 // min(elem_c, elem_o))     # 8 for f32, 16 for bf16 tiles
    base = sub // math.gcd(Wout, sub)           # smallest tm with aligned M
    if row_block is None:
        target_rows = max(1, 256 // Wout)       # aim for M >= 256 per dot
        TM = base * max(1, -(-target_rows // base))
    else:
        TM = int(row_block)
    TM = min(TM, base * (-(-Hout // base)))
    assert (TM * Wout) % 8 == 0, (TM, Wout)
    n_rb = -(-Hout // TM)
    Hout_pad = n_rb * TM

    # ---- glue: spatial zero pad in NHWC (no HBM im2col) ----
    Hp_need = (Hout_pad - 1) * stride + KH
    Wp_need = (Wout - 1) * stride + KW
    extra_h = max(0, Hp_need - (H + 2 * padding))
    extra_w = max(0, Wp_need - (W + 2 * padding))
    x = jnp.pad(x_nhwc.astype(compute_dtype),
                ((0, 0),
                 (padding, padding + extra_h),
                 (padding, padding + extra_w),
                 (0, 0)))
    Hp, Wp = x.shape[1], x.shape[2]

    # ---- fold eval-mode BN: scale into weight, keep shift for the epilogue ----
    inv_std = 1.0 / jnp.sqrt(running_var.astype(jnp.float32) + eps)
    scale = gamma.astype(jnp.float32) * inv_std                       # (Cout,)
    shift = beta.astype(jnp.float32) - running_mean.astype(jnp.float32) * scale
    shift = jnp.pad(shift, (0, Cout_pad - Cout)).reshape(1, Cout_pad)

    # (Cout, Cin, KH, KW) -> (KH, KW, Cin, Cout), scale folded, Cout padded.
    w = jnp.transpose(weight.astype(jnp.float32), (2, 3, 1, 0)) * scale
    w = jnp.pad(w, ((0, 0), (0, 0), (0, 0), (0, Cout_pad - Cout)))

    pack_taps = Cin < 128                       # shallow contraction -> pack K
    K_pack = KH * KW * Cin
    if pack_taps:
        w = w.reshape(K_pack, Cout_pad).astype(compute_dtype)
        w_spec = pl.BlockSpec((K_pack, Cout_pad), lambda n, rb: (0, 0))
        scratch = pltpu.VMEM((TM * Wout, K_pack), compute_dtype)
    else:
        w = w.reshape(KH * KW, Cin, Cout_pad).astype(compute_dtype)
        w_spec = pl.BlockSpec((KH * KW, Cin, Cout_pad), lambda n, rb: (0, 0, 0))
        scratch = pltpu.VMEM((TM * Wout, Cout_pad), jnp.float32)

    kernel = functools.partial(_conv_bn_relu_kernel, KH=KH, KW=KW,
                               stride=stride, TM=TM, Wout=Wout, Cin=Cin,
                               pack_taps=pack_taps)

    # ---- generation-aware VMEM budget from actual double-buffered blocks ----
    x_blk = Hp * Wp * Cin * elem_c
    w_blk = int(w.size) * elem_c
    out_blk = TM * Wout * Cout_pad * elem_o
    scr_blk = (TM * Wout * K_pack * elem_c if pack_taps
               else TM * Wout * Cout_pad * 4)
    need = 2 * x_blk + 2 * w_blk + 2 * Cout_pad * 4 + 2 * out_blk + scr_blk
    try:
        vmem_cap = int(pltpu.get_tpu_info().vmem_capacity_bytes)
    except Exception:
        vmem_cap = 64 << 20                     # conservative (v7x per-TC size)
    vmem_limit = int(min(max(2 * need, 32 << 20), vmem_cap - (8 << 20)))

    cost = pl.CostEstimate(
        flops=2 * N * Hout * Wout * KH * KW * Cin * Cout,
        transcendentals=0,
        bytes_accessed=(N * x_blk + w_blk + Cout_pad * 4
                        + N * Hout_pad * Wout * Cout_pad * elem_o))

    out = pl.pallas_call(
        kernel,
        out_shape=jax.ShapeDtypeStruct((N, Hout_pad * Wout, Cout_pad),
                                       out_dtype),
        grid_spec=pltpu.PrefetchScalarGridSpec(
            num_scalar_prefetch=0,
            grid=(N, n_rb),
            in_specs=[
                # whole padded image stays resident across the row-slab axis
                pl.BlockSpec((1, Hp, Wp, Cin), lambda n, rb: (n, 0, 0, 0)),
                w_spec,
                pl.BlockSpec((1, Cout_pad), lambda n, rb: (0, 0)),
            ],
            out_specs=pl.BlockSpec((1, TM * Wout, Cout_pad),
                                   lambda n, rb: (n, rb, 0)),
            scratch_shapes=[scratch],
        ),
        compiler_params=pltpu.CompilerParams(
            dimension_semantics=("parallel", "parallel"),
            vmem_limit_bytes=vmem_limit),
        cost_estimate=cost,
    )(x, w, shift)

    out = out.reshape(N, Hout_pad, Wout, Cout_pad)[:, :Hout, :, :Cout]
    return out


def basic_conv2d(x_nchw, weight, gamma, beta, running_mean, running_var, *,
                 stride=1, padding=1, eps=1e-3,
                 compute_dtype=jnp.bfloat16, out_dtype=None, row_block=None):
    """PyTorch-parity entry point: NCHW in, NCHW out.

    When chaining BasicConv2d blocks prefer basic_conv2d_nhwc (keeps
    activations NHWC and avoids both layout transposes).
    """
    x_nhwc = jnp.transpose(x_nchw, (0, 2, 3, 1))
    y = basic_conv2d_nhwc(x_nhwc, weight, gamma, beta, running_mean,
                          running_var, stride=stride, padding=padding, eps=eps,
                          compute_dtype=compute_dtype, out_dtype=out_dtype,
                          row_block=row_block)
    return jnp.transpose(y, (0, 3, 1, 2))


def _reference(x, w, gamma, beta, mean, var, *, stride=1, padding=1, eps=1e-3):
    y = jax.lax.conv_general_dilated(
        x, w, window_strides=(stride, stride),
        padding=[(padding, padding), (padding, padding)],
        dimension_numbers=("NCHW", "OIHW", "NCHW"))
    inv_std = 1.0 / jnp.sqrt(var + eps)
    y = (y - mean[None, :, None, None]) * (gamma * inv_std)[None, :, None, None] \
        + beta[None, :, None, None]
    return jnp.maximum(y, 0.0)


if __name__ == "__main__":
    key = jax.random.PRNGKey(0)
    k_x, k_w, k_g, k_b, k_m, k_v = jax.random.split(key, 6)

    # BasicConv2d(in_channels=4, out_channels=8, kernel_size=3, padding=1)
    N, Cin, H, W = 2, 4, 16, 16
    Cout, KH, KW = 8, 3, 3

    x = jax.random.normal(k_x, (N, Cin, H, W), dtype=jnp.float32)
    w = jax.random.normal(k_w, (Cout, Cin, KH, KW), dtype=jnp.float32) * 0.1
    gamma = jax.random.uniform(k_g, (Cout,), minval=0.5, maxval=1.5,
                               dtype=jnp.float32)
    beta = jax.random.normal(k_b, (Cout,), dtype=jnp.float32) * 0.1
    running_mean = jax.random.normal(k_m, (Cout,), dtype=jnp.float32) * 0.1
    running_var = jax.random.uniform(k_v, (Cout,), minval=0.5, maxval=1.5,
                                     dtype=jnp.float32)

    ref = _reference(x, w, gamma, beta, running_mean, running_var,
                     stride=1, padding=1, eps=1e-3)

    # 1) f32 MXU operands, default tiling (single row slab): tight check.
    fn_f32 = jax.jit(functools.partial(basic_conv2d,
                                       compute_dtype=jnp.float32))
    out_f32 = jax.block_until_ready(
        fn_f32(x, w, gamma, beta, running_mean, running_var))
    assert out_f32.shape == (N, Cout, H, W), out_f32.shape
    assert jnp.allclose(out_f32, ref, atol=1e-4, rtol=1e-4), \
        float(jnp.max(jnp.abs(out_f32 - ref)))

    # 2) f32, forced multi-row-block grid (row_block=4 -> grid=(N, 4)):
    #    exercises the halo'd output-row-slab path.
    fn_rb = jax.jit(functools.partial(basic_conv2d,
                                      compute_dtype=jnp.float32, row_block=4))
    out_rb = jax.block_until_ready(
        fn_rb(x, w, gamma, beta, running_mean, running_var))
    assert jnp.allclose(out_rb, ref, atol=1e-4, rtol=1e-4), \
        float(jnp.max(jnp.abs(out_rb - ref)))

    # 3) default bf16 operands + bf16 output (f32 MXU accumulation): looser
    #    tolerance from bf16 operand/output rounding only (numerics proven
    #    above in f32).
    fn_bf16 = jax.jit(basic_conv2d)
    out_bf16 = jax.block_until_ready(
        fn_bf16(x, w, gamma, beta, running_mean, running_var))
    assert out_bf16.shape == (N, Cout, H, W), out_bf16.shape
    err = jnp.max(jnp.abs(out_bf16.astype(jnp.float32) - ref))
    assert jnp.allclose(out_bf16.astype(jnp.float32), ref,
                        atol=7.5e-2, rtol=7.5e-2), float(err)

    print("KERNEL_OK")
</pallas_src>

<mosaic_0001>
module attributes {stable_mosaic.version = 11 : i64} {
  func.func @_conv_bn_relu_kernel(%arg0: i32, %arg1: i32, %arg2: memref<1x18x18x4xf32, #tpu.memory_space<vmem>>, %arg3: memref<36x128xf32, #tpu.memory_space<vmem>>, %arg4: memref<1x128xf32, #tpu.memory_space<vmem>>, %arg5: memref<1x256x128xf32, #tpu.memory_space<vmem>>, %arg6: memref<256x36xf32, #tpu.memory_space<vmem>>) attributes {dimension_semantics = [#tpu.dimension_semantics<parallel>, #tpu.dimension_semantics<parallel>], iteration_bounds = array<i64: 2, 1>, scalar_prefetch = 0 : i64, scratch_operands = 1 : i64, tpu.core_type = #tpu.core_type<tc>, window_params = [{transform_indices = @transform_0, window_bounds = array<i64: 1, 18, 18, 4>}, {pipeline_mode = #tpu.pipeline_mode<synchronous>, transform_indices = @transform_1, window_bounds = array<i64: 36, 128>}, {pipeline_mode = #tpu.pipeline_mode<synchronous>, transform_indices = @transform_2, window_bounds = array<i64: 1, 128>}, {transform_indices = @transform_3, window_bounds = array<i64: 1, 256, 128>}]} {
    %c16_i32 = arith.constant 16 : i32
    %0 = arith.muli %arg1, %c16_i32 : i32
    %1 = tpu.assume_multiple %0, 8 : i32
    %c0_i32 = arith.constant 0 : i32
    %2 = arith.addi %1, %c0_i32 : i32
    %c0 = arith.constant 0 : index
    %3 = arith.index_cast %2 : i32 to index
    %c0_0 = arith.constant 0 : index
    %c0_1 = arith.constant 0 : index
    %4 = vector.load %arg2[%c0, %3, %c0_0, %c0_1] : memref<1x18x18x4xf32, #tpu.memory_space<vmem>>, vector<1x16x16x4xf32>
    %5 = vector.shape_cast %4 : vector<1x16x16x4xf32> to vector<16x16x4xf32>
    %c0_i32_2 = arith.constant 0 : i32
    %6 = arith.addi %1, %c0_i32_2 : i32
    %c0_3 = arith.constant 0 : index
    %7 = arith.index_cast %6 : i32 to index
    %c1 = arith.constant 1 : index
    %c0_4 = arith.constant 0 : index
    %8 = vector.load %arg2[%c0_3, %7, %c1, %c0_4] : memref<1x18x18x4xf32, #tpu.memory_space<vmem>>, vector<1x16x16x4xf32>
    %9 = vector.shape_cast %8 : vector<1x16x16x4xf32> to vector<16x16x4xf32>
    %c0_i32_5 = arith.constant 0 : i32
    %10 = arith.addi %1, %c0_i32_5 : i32
    %c0_6 = arith.constant 0 : index
    %11 = arith.index_cast %10 : i32 to index
    %c2 = arith.constant 2 : index
    %c0_7 = arith.constant 0 : index
    %12 = vector.load %arg2[%c0_6, %11, %c2, %c0_7] : memref<1x18x18x4xf32, #tpu.memory_space<vmem>>, vector<1x16x16x4xf32>
    %13 = vector.shape_cast %12 : vector<1x16x16x4xf32> to vector<16x16x4xf32>
    %c1_i32 = arith.constant 1 : i32
    %14 = arith.addi %1, %c1_i32 : i32
    %c0_8 = arith.constant 0 : index
    %15 = arith.index_cast %14 : i32 to index
    %c0_9 = arith.constant 0 : index
    %c0_10 = arith.constant 0 : index
    %16 = vector.load %arg2[%c0_8, %15, %c0_9, %c0_10] : memref<1x18x18x4xf32, #tpu.memory_space<vmem>>, vector<1x16x16x4xf32>
    %17 = vector.shape_cast %16 : vector<1x16x16x4xf32> to vector<16x16x4xf32>
    %c1_i32_11 = arith.constant 1 : i32
    %18 = arith.addi %1, %c1_i32_11 : i32
    %c0_12 = arith.constant 0 : index
    %19 = arith.index_cast %18 : i32 to index
    %c1_13 = arith.constant 1 : index
    %c0_14 = arith.constant 0 : index
    %20 = vector.load %arg2[%c0_12, %19, %c1_13, %c0_14] : memref<1x18x18x4xf32, #tpu.memory_space<vmem>>, vector<1x16x16x4xf32>
    %21 = vector.shape_cast %20 : vector<1x16x16x4xf32> to vector<16x16x4xf32>
    %c1_i32_15 = arith.constant 1 : i32
    %22 = arith.addi %1, %c1_i32_15 : i32
    %c0_16 = arith.constant 0 : index
    %23 = arith.index_cast %22 : i32 to index
    %c2_17 = arith.constant 2 : index
    %c0_18 = arith.constant 0 : index
    %24 = vector.load %arg2[%c0_16, %23, %c2_17, %c0_18] : memref<1x18x18x4xf32, #tpu.memory_space<vmem>>, vector<1x16x16x4xf32>
    %25 = vector.shape_cast %24 : vector<1x16x16x4xf32> to vector<16x16x4xf32>
    %c2_i32 = arith.constant 2 : i32
    %26 = arith.addi %1, %c2_i32 : i32
    %c0_19 = arith.constant 0 : index
    %27 = arith.index_cast %26 : i32 to index
    %c0_20 = arith.constant 0 : index
    %c0_21 = arith.constant 0 : index
    %28 = vector.load %arg2[%c0_19, %27, %c0_20, %c0_21] : memref<1x18x18x4xf32, #tpu.memory_space<vmem>>, vector<1x16x16x4xf32>
    %29 = vector.shape_cast %28 : vector<1x16x16x4xf32> to vector<16x16x4xf32>
    %c2_i32_22 = arith.constant 2 : i32
    %30 = arith.addi %1, %c2_i32_22 : i32
    %c0_23 = arith.constant 0 : index
    %31 = arith.index_cast %30 : i32 to index
    %c1_24 = arith.constant 1 : index
    %c0_25 = arith.constant 0 : index
    %32 = vector.load %arg2[%c0_23, %31, %c1_24, %c0_25] : memref<1x18x18x4xf32, #tpu.memory_space<vmem>>, vector<1x16x16x4xf32>
    %33 = vector.shape_cast %32 : vector<1x16x16x4xf32> to vector<16x16x4xf32>
    %c2_i32_26 = arith.constant 2 : i32
    %34 = arith.addi %1, %c2_i32_26 : i32
    %c0_27 = arith.constant 0 : index
    %35 = arith.index_cast %34 : i32 to index
    %c2_28 = arith.constant 2 : index
    %c0_29 = arith.constant 0 : index
    %36 = vector.load %arg2[%c0_27, %35, %c2_28, %c0_29] : memref<1x18x18x4xf32, #tpu.memory_space<vmem>>, vector<1x16x16x4xf32>
    %37 = vector.shape_cast %36 : vector<1x16x16x4xf32> to vector<16x16x4xf32>
    %38 = tpu.concatenate %5, %9, %13, %17, %21, %25, %29, %33, %37 in 2 : vector<16x16x4xf32>, vector<16x16x4xf32>, vector<16x16x4xf32>, vector<16x16x4xf32>, vector<16x16x4xf32>, vector<16x16x4xf32>, vector<16x16x4xf32>, vector<16x16x4xf32>, vector<16x16x4xf32> -> vector<16x16x36xf32>
    %39 = vector.shape_cast %38 : vector<16x16x36xf32> to vector<256x36xf32>
    %c0_30 = arith.constant 0 : index
    %c0_31 = arith.constant 0 : index
    %40 = vector.load %arg6[%c0_30, %c0_31] : memref<256x36xf32, #tpu.memory_space<vmem>>, vector<256x36xf32>
    tpu.vector_store %arg6[%c0_30, %c0_31], %39 {strides = array<i32>} : memref<256x36xf32, #tpu.memory_space<vmem>>, vector<256x36xf32>,
    %c0_32 = arith.constant 0 : index
    %c0_33 = arith.constant 0 : index
    %41 = vector.load %arg6[%c0_32, %c0_33] : memref<256x36xf32, #tpu.memory_space<vmem>>, vector<256x36xf32>
    %c0_34 = arith.constant 0 : index
    %c0_35 = arith.constant 0 : index
    %42 = vector.load %arg3[%c0_34, %c0_35] : memref<36x128xf32, #tpu.memory_space<vmem>>, vector<36x128xf32>
    %cst = arith.constant dense<0.000000e+00> : vector<256x128xf32>
    %43 = tpu.matmul %41, %42, %cst {dimension_numbers = #tpu.dot_dimension_numbers<[1], [0], [0], [1], [0, 0, 1, 1], [], []>} : vector<256x36xf32>, vector<36x128xf32>, vector<256x128xf32> -> vector<256x128xf32>
    %c0_36 = arith.constant 0 : index
    %c0_37 = arith.constant 0 : index
    %44 = vector.load %arg4[%c0_36, %c0_37] : memref<1x128xf32, #tpu.memory_space<vmem>>, vector<1x128xf32>
    %45 = vector.broadcast %44 : vector<1x128xf32> to vector<256x128xf32>
    %46 = arith.addf %43, %45 : vector<256x128xf32>
    %cst_38 = arith.constant 0.000000e+00 : f32
    %47 = vector.broadcast %cst_38 : f32 to vector<256x128xf32>
    %48 = arith.maximumf %46, %47 : vector<256x128xf32>
    %c0_39 = arith.constant 0 : index
    %c0_40 = arith.constant 0 : index
    %c0_41 = arith.constant 0 : index
    %49 = vector.load %arg5[%c0_39, %c0_40, %c0_41] : memref<1x256x128xf32, #tpu.memory_space<vmem>>, vector<1x256x128xf32>
    %50 = vector.shape_cast %49 : vector<1x256x128xf32> to vector<256x128xf32>
    %51 = vector.shape_cast %48 : vector<256x128xf32> to vector<1x256x128xf32>
    tpu.vector_store %arg5[%c0_39, %c0_40, %c0_41], %51 {strides = array<i32>} : memref<1x256x128xf32, #tpu.memory_space<vmem>>, vector<1x256x128xf32>,
    return
  }
  func.func @transform_0(%arg0: i32, %arg1: i32) -> (i32, i32, i32, i32) {
    %c0_i32 = arith.constant 0 : i32
    %c0_i32_0 = arith.constant 0 : i32
    %c0_i32_1 = arith.constant 0 : i32
    %c0_i32_2 = arith.constant 0 : i32
    return %arg0, %c0_i32, %c0_i32_0, %c0_i32_1 : i32, i32, i32, i32
  }
  func.func @transform_1(%arg0: i32, %arg1: i32) -> (i32, i32) {
    %c0_i32 = arith.constant 0 : i32
    %c0_i32_0 = arith.constant 0 : i32
    %c0_i32_1 = arith.constant 0 : i32
    return %c0_i32, %c0_i32_0 : i32, i32
  }
  func.func @transform_2(%arg0: i32, %arg1: i32) -> (i32, i32) {
    %c0_i32 = arith.constant 0 : i32
    %c0_i32_0 = arith.constant 0 : i32
    %c0_i32_1 = arith.constant 0 : i32
    return %c0_i32, %c0_i32_0 : i32, i32
  }
  func.func @transform_3(%arg0: i32, %arg1: i32) -> (i32, i32, i32) {
    %c0_i32 = arith.constant 0 : i32
    %c0_i32_0 = arith.constant 0 : i32
    return %arg0, %arg1, %c0_i32 : i32, i32, i32
  }
}

</mosaic_0001>

<bundles_post_ra>
// kernel: basic_conv2d.1
= control target key start
LH: loop header
LB: loop body
LE: loop exit
PB: predicated region body
PF: predicated region fallthrough
CT: control target
= control target key end

     0   :  { %s2562_s12 = smov 0   ;;  %s2564_s13 = smov 0   ;;  %s4388_s0 = inlined_call_operand.vmem [shape: f32[2,18,18,4], index: 0, kind: input, shape index: {}]   ;;  %s4389_s1 = inlined_call_operand.vmem [shape: f32[36,128], index: 1, kind: input, shape index: {}]   ;;  %s4390_s2 = inlined_call_operand.vmem [shape: f32[1,128], index: 2, kind: input, shape index: {}]   ;;  %s4391_s3 = inlined_call_operand.vmem [shape: f32[2,256,128], index: 3, kind: output, shape index: {}]  }
   0x1   :  { %s2566_s14 = smov 0  }
   0x2 LB: > { %s25_s15 = sadd.s32 1, %s2528_s13  ;;  %p2225_p0 = scmp.ge.s32.totalorder %s2532_s14, 1  ;;  %s2532_s14 = sphi %s2566_s14, %s13_s14   ;;  %s2528_s13 = sphi %s2564_s13, %s4674_s13   ;;  %s2524_s12 = sphi %s2562_s12, %s4673_s12  }
   0x3   : > { %p27_p1 = scmp.ge.s32.totalorder %s25_s15, 2  ;;  %p151_p2 = scmp.lt.s32.totalorder %s2532_s14, 3 }
   0x5   : > { %s4676_s15 = smov (%p27_p1, %s25_s15), 0  ;;  %p152_p3 = pnand %p2225_p0, %p151_p2 }
   0x7   : > { %155 = sbr.rel (%p152_p3) target bundleno = 955 (0x3bb), region = 32 }
   0xc   : > { %p179_p4 = scmp.lt.s32.totalorder %s2524_s12, 1  ;;  %s2534_s20 = smov 4   ;;  %vm1515_vm0 = vcmask 31744   ;;  %vm1548_vm1 = vcmask 64512   ;;  %vm1581_vm2 = vcmask 97280   ;;  %vm1614_vm3 = vcmask 130048  }
   0xd   : > { %s2535_s21 = smov 8   ;;  %s2536_s22 = smov 12   ;;  %vm1647_vm4 = vcmask 162816   ;;  %vm1680_vm5 = vcmask 195584   ;;  %vm1949_vm6 = vcmask 1043456   ;;  %vm1746_vm7 = vcmask 261120  }
   0xe   : > { %s4678_s12 = smov (!%p179_p4, %s2524_s12), 1  ;;  %s2537_s23 = smov 16   ;;  %vm1713_vm8 = vcmask 228352   ;;  %vm1779_vm9 = vcmask 293888  }
   0xf   : > { %s2472_s16 = smul.u32 432, %s4678_s12  ;;  %s2538_s24 = smov 20  }
  0x10   : > { %s2539_s25 = smov 24   ;;  %s2540_s26 = smov 28  }
  0x11   : > { %s2586_s19 = scalar_lea.vmem %s4388_s0, %s2472_s16  ;;  %s2541_s27 = smov 32  }
  0x12   : > { %v2589_v0 = vld [vmem:[%s2586_s19 + $0x31] sm:$0xff]  ;;  %v2592_v1 = vld [vmem:[%s2586_s19 + $0x19] sm:$0xff]  ;;  %v229_v2 = vld [vmem:[%s2586_s19 + $0x1] sm:$0xff]  ;;  %s2456_s17 = sshll.u32 %s4678_s12, 8 }
  0x13   : > { %531 = vrot.lane.b32.xlu2 %v2589_v0, %s2534_s20  ;;  %527 = vrot.lane.b32.xlu1 %v2592_v1, %s2534_s20  ;;  %v2601_v3 = vld [vmem:[%s2586_s19 + $0x39] sm:$0xff]  ;;  %v2604_v4 = vld [vmem:[%s2586_s19 + $0x21] sm:$0xff] }
  0x14   : > { %523 = vrot.lane.b32.xlu0 %v229_v2, %s2534_s20  ;;  %v230_v5 = vld [vmem:[%s2586_s19 + $0x9] sm:$0xff]  ;;  %v2613_v6 = vld [vmem:[%s2586_s19 + $0x61] sm:$0xff]  ;;  %v2616_v7 = vld [vmem:[%s2586_s19 + $0x51] sm:$0xff] }
  0x15   : > { %v2619_v8 = vld [vmem:[%s2586_s19 + $0x49] sm:$0xff]  ;;  %v2628_v9 = vld [vmem:[%s2586_s19 + $0x81] sm:$0xff]  ;;  %v2631_v10 = vld [vmem:[%s2586_s19 + $0x79] sm:$0xff] }
  0x16   : > { %v2634_v11 = vld [vmem:[%s2586_s19 + $0x69] sm:$0xff]  ;;  %v2646_v13 = vld [vmem:[%s2586_s19 + $0x99] sm:$0xff]  ;;  %v2649_v14 = vld [vmem:[%s2586_s19 + $0x91] sm:$0xff] }
  0x17   : > { %v2643_v12 = vld [vmem:[%s2586_s19 + $0xa9] sm:$0xff]  ;;  %v2661_v16 = vld [vmem:[%s2586_s19 + $0xc1] sm:$0xff]  ;;  %v2664_v17 = vld [vmem:[%s2586_s19 + $0xb1] sm:$0xff] }
  0x18   : > { %v2658_v15 = vld [vmem:[%s2586_s19 + $0xc9] sm:$0xff]  ;;  %v2673_v18 = vld [vmem:[%s2586_s19 + $0xf1] sm:$0xff]  ;;  %v2676_v19 = vld [vmem:[%s2586_s19 + $0xe1] sm:$0xff] }
  0x19   : > { %v2679_v20 = vld [vmem:[%s2586_s19 + $0xd9] sm:$0xff]  ;;  %v2688_v21 = vld [vmem:[%s2586_s19 + $0x111] sm:$0xff]  ;;  %v2691_v22 = vld [vmem:[%s2586_s19 + $0x109] sm:$0xff] }
  0x1a   : > { %v2694_v23 = vld [vmem:[%s2586_s19 + $0xf9] sm:$0xff]  ;;  %v2706_v25 = vld [vmem:[%s2586_s19 + $0x129] sm:$0xff]  ;;  %v2709_v26 = vld [vmem:[%s2586_s19 + $0x121] sm:$0xff] }
  0x1b   : > { %533 = vrot.lane.b32.xlu2 %v2601_v3, %s2534_s20  ;;  %529 = vrot.lane.b32.xlu1 %v2604_v4, %s2534_s20  ;;  %v2703_v24 = vld [vmem:[%s2586_s19 + $0x139] sm:$0xff]  ;;  %v2721_v28 = vld [vmem:[%s2586_s19 + $0x151] sm:$0xff] }
  0x1c   : > { %525 = vrot.lane.b32.xlu0 %v230_v5, %s2534_s20  ;;  %v2718_v27 = vld [vmem:[%s2586_s19 + $0x159] sm:$0xff]  ;;  %v2724_v29 = vld [vmem:[%s2586_s19 + $0x141] sm:$0xff]  ;;  %v2734_v31 = vld [vmem:[%s2586_s19 + $0x171] sm:$0xff] }
  0x1d   : > { %v261_v30 = vld [vmem:[%s2586_s19 + $0x2] sm:$0xff]  ;;  %v2748_v34 = vld [vmem:[%s2586_s19 + $0x1a] sm:$0xff]  ;;  %v262_v35 = vld [vmem:[%s2586_s19 + $0xa] sm:$0xff] }
  0x1e   : > { %v2737_v32 = vld [vmem:[%s2586_s19 + $0x169] sm:$0xff]  ;;  %v2762_v38 = vld [vmem:[%s2586_s19 + $0x3a] sm:$0xff]  ;;  %v2765_v39 = vld [vmem:[%s2586_s19 + $0x32] sm:$0xff] }
  0x1f   : > { %v2745_v33 = vld [vmem:[%s2586_s19 + $0x22] sm:$0xff]  ;;  %v2759_v37 = vld [vmem:[%s2586_s19 + $0x4a] sm:$0xff]  ;;  %v2782_v43 = vld [vmem:[%s2586_s19 + $0x52] sm:$0xff] }
  0x20   : > { %v2776_v41 = vld [vmem:[%s2586_s19 + $0x6a] sm:$0xff]  ;;  %v2779_v42 = vld [vmem:[%s2586_s19 + $0x62] sm:$0xff]  ;;  %v2793_v45 = vld [vmem:[%s2586_s19 + $0x92] sm:$0xff] }
  0x21   : > { %v2796_v46 = vld [vmem:[%s2586_s19 + $0x82] sm:$0xff]  ;;  %v2799_v47 = vld [vmem:[%s2586_s19 + $0x7a] sm:$0xff]  ;;  %v2814_v51 = vld [vmem:[%s2586_s19 + $0xb2] sm:$0xff] }
  0x22   : > { %v2817_v52 = vld [vmem:[%s2586_s19 + $0xaa] sm:$0xff]  ;;  %v2820_v53 = vld [vmem:[%s2586_s19 + $0x9a] sm:$0xff]  ;;  %v2841_v59 = vld [vmem:[%s2586_s19 + $0xc2] sm:$0xff] }
  0x23   : > { %539 = vrot.lane.b32.xlu2 %v2613_v6, %s2534_s20  ;;  %537 = vrot.lane.b32.xlu1 %v2616_v7, %s2534_s20  ;;  %v2835_v57 = vld [vmem:[%s2586_s19 + $0xda] sm:$0xff]  ;;  %v2838_v58 = vld [vmem:[%s2586_s19 + $0xca] sm:$0xff] }
  0x24   : > { %535 = vrot.lane.b32.xlu0 %v2619_v8, %s2534_s20  ;;  %v2856_v63 = vld [vmem:[%s2586_s19 + $0xfa] sm:$0xff]  ;;  %v2859_v2 = vld [vmem:[%s2586_s19 + $0xf2] sm:$0xff]  ;;  %v2862_v5 = vld [vmem:[%s2586_s19 + $0xe2] sm:$0xff] }
  0x2b   : > { %545 = vrot.lane.b32.xlu2 %v2628_v9, %s2534_s20  ;;  %543 = vrot.lane.b32.xlu1 %v2631_v10, %s2534_s20 }
  0x2c   : > { %541 = vrot.lane.b32.xlu0 %v2634_v11, %s2534_s20 }
  0x33   : > { %551 = vrot.lane.b32.xlu2 %v2643_v12, %s2534_s20  ;;  %549 = vrot.lane.b32.xlu1 %v2646_v13, %s2534_s20 }
  0x34   : > { %547 = vrot.lane.b32.xlu0 %v2649_v14, %s2534_s20 }
  0x3b   : > { %557 = vrot.lane.b32.xlu2 %v2658_v15, %s2534_s20  ;;  %555 = vrot.lane.b32.xlu1 %v2661_v16, %s2534_s20 }
  0x3c   : > { %553 = vrot.lane.b32.xlu0 %v2664_v17, %s2534_s20 }
  0x43   : > { %563 = vrot.lane.b32.xlu2 %v2673_v18, %s2534_s20  ;;  %561 = vrot.lane.b32.xlu1 %v2676_v19, %s2534_s20 }
  0x44   : > { %559 = vrot.lane.b32.xlu0 %v2679_v20, %s2534_s20 }
  0x4b   : > { %569 = vrot.lane.b32.xlu2 %v2688_v21, %s2534_s20  ;;  %567 = vrot.lane.b32.xlu1 %v2691_v22, %s2534_s20 }
  0x4c   : > { %565 = vrot.lane.b32.xlu0 %v2694_v23, %s2534_s20 }
  0x53   : > { %575 = vrot.lane.b32.xlu2 %v2703_v24, %s2534_s20  ;;  %573 = vrot.lane.b32.xlu1 %v2706_v25, %s2534_s20 }
  0x54   : > { %571 = vrot.lane.b32.xlu0 %v2709_v26, %s2534_s20 }
  0x5b   : > { %581 = vrot.lane.b32.xlu2 %v2718_v27, %s2534_s20  ;;  %579 = vrot.lane.b32.xlu1 %v2721_v28, %s2534_s20 }
  0x5c   : > { %577 = vrot.lane.b32.xlu0 %v2724_v29, %s2534_s20 }
  0x63   : > { %651 = vrot.lane.b32.xlu2 %v261_v30, %s2535_s21  ;;  %585 = vrot.lane.b32.xlu1 %v2734_v31, %s2534_s20 }
  0x64   : > { %583 = vrot.lane.b32.xlu0 %v2737_v32, %s2534_s20  ;;  %s4263_s20 = scalar_lea.vmem %s4391_s3, %s2456_s17 }
  0x6b   : > { %657 = vrot.lane.b32.xlu2 %v2745_v33, %s2535_s21  ;;  %655 = vrot.lane.b32.xlu1 %v2748_v34, %s2535_s21 }
  0x6c   : > { %653 = vrot.lane.b32.xlu0 %v262_v35, %s2535_s21 }
  0x6d   : > { %v2756_v36 = vpop.permute.xlu2 %531 }
  0x6e   : > { %4440 = vst [vmem:[#allocation3_spill] sm:$0xff] %v2756_v36  ;;  %v2901_v36 = vld [vmem:[%s2586_s19 + $0x13a] sm:$0xff] }
  0x73   : > { %663 = vrot.lane.b32.xlu2 %v2759_v37, %s2535_s21  ;;  %661 = vrot.lane.b32.xlu1 %v2762_v38, %s2535_s21 }
  0x74   : > { %659 = vrot.lane.b32.xlu0 %v2765_v39, %s2535_s21 }
  0x75   : > { %v2773_v40 = vpop.permute.xlu2 %533 }
  0x76   : > { %4441 = vst [vmem:[#allocation4_spill] sm:$0xff] %v2773_v40  ;;  %v2880_v40 = vld [vmem:[%s2586_s19 + $0x112] sm:$0xff] }
  0x7b   : > { %669 = vrot.lane.b32.xlu2 %v2776_v41, %s2535_s21  ;;  %667 = vrot.lane.b32.xlu1 %v2779_v42, %s2535_s21 }
  0x7c   : > { %665 = vrot.lane.b32.xlu0 %v2782_v43, %s2535_s21 }
  0x7d   : > { %v2790_v44 = vpop.permute.xlu2 %539 }
  0x7e   : > { %4442 = vst [vmem:[#allocation5_spill] sm:$0xff] %v2790_v44 }
  0x83   : > { %675 = vrot.lane.b32.xlu2 %v2793_v45, %s2535_s21  ;;  %673 = vrot.lane.b32.xlu1 %v2796_v46, %s2535_s21 }
  0x84   : > { %671 = vrot.lane.b32.xlu0 %v2799_v47, %s2535_s21 }
  0x85   : > { %v2807_v48 = vpop.permute.xlu2 %545  ;;  %v2809_v49 = vpop.permute.xlu1 %527 }
  0x86   : > { %4443 = vst [vmem:[#allocation6_spill] sm:$0xff] %v2807_v48  ;;  %v2811_v50 = vpop.permute.xlu0 %523  ;;  %v2877_v48 = vld [vmem:[%s2586_s19 + $0x122] sm:$0xff] }
  0x87   : > { %4444 = vst [vmem:[#allocation7_spill] sm:$0xff] %v2809_v49  ;;  %v2940_v49 = vld [vmem:[%s2586_s19 + $0x172] sm:$0xff] }
  0x88   : > { %4445 = vst [vmem:[#allocation8_spill] sm:$0xff] %v2811_v50 }
  0x89   : > { %4468 = vst [vmem:[#allocation31_spill] sm:$0xff] %v2940_v49 }
  0x8b   : > { %681 = vrot.lane.b32.xlu2 %v2814_v51, %s2535_s21  ;;  %679 = vrot.lane.b32.xlu1 %v2817_v52, %s2535_s21 }
  0x8c   : > { %677 = vrot.lane.b32.xlu0 %v2820_v53, %s2535_s21 }
  0x8d   : > { %v2828_v54 = vpop.permute.xlu2 %551  ;;  %v2830_v55 = vpop.permute.xlu1 %529 }
  0x8e   : > { %4446 = vst [vmem:[#allocation9_spill] sm:$0xff] %v2828_v54  ;;  %v2832_v56 = vpop.permute.xlu0 %525  ;;  %v2925_v54 = vld [vmem:[%s2586_s19 + $0x152] sm:$0xff] }
  0x8f   : > { %4447 = vst [vmem:[#allocation10_spill] sm:$0xff] %v2830_v55  ;;  %v2943_v55 = vld [vmem:[%s2586_s19 + $0x18] sm:$0xff] }
  0x90   : > { %4448 = vst [vmem:[#allocation11_spill] sm:$0xff] %v2832_v56  ;;  %v2904_v56 = vld [vmem:[%s2586_s19 + $0x12a] sm:$0xff] }
  0x91   : > { %4464 = vst [vmem:[#allocation27_spill] sm:$0xff] %v2925_v54 }
  0x92   : > { %4469 = vst [vmem:[#allocation32_spill] sm:$0xff] %v2943_v55 }
  0x93   : > { %687 = vrot.lane.b32.xlu2 %v2835_v57, %s2535_s21  ;;  %685 = vrot.lane.b32.xlu1 %v2838_v58, %s2535_s21 }
  0x94   : > { %683 = vrot.lane.b32.xlu0 %v2841_v59, %s2535_s21 }
  0x95   : > { %v2849_v60 = vpop.permute.xlu2 %557  ;;  %v2851_v61 = vpop.permute.xlu1 %537 }
  0x96   : > { %4449 = vst [vmem:[#allocation12_spill] sm:$0xff] %v2849_v60  ;;  %v2853_v62 = vpop.permute.xlu0 %535  ;;  %v2919_v60 = vld [vmem:[%s2586_s19 + $0x16a] sm:$0xff] }
  0x97   : > { %4450 = vst [vmem:[#allocation13_spill] sm:$0xff] %v2851_v61  ;;  %v2898_v61 = vld [vmem:[%s2586_s19 + $0x142] sm:$0xff] }
  0x98   : > { %4451 = vst [vmem:[#allocation14_spill] sm:$0xff] %v2853_v62  ;;  %v2883_v62 = vld [vmem:[%s2586_s19 + $0x10a] sm:$0xff] }
  0x99   : > { %4458 = vst [vmem:[#allocation21_spill] sm:$0xff] %v2898_v61 }
  0x9a   : > { %4462 = vst [vmem:[#allocation25_spill] sm:$0xff] %v2919_v60 }
  0x9b   : > { %693 = vrot.lane.b32.xlu2 %v2856_v63, %s2535_s21  ;;  %691 = vrot.lane.b32.xlu1 %v2859_v2, %s2535_s21 }
  0x9c   : > { %689 = vrot.lane.b32.xlu0 %v2862_v5, %s2535_s21 }
  0x9d   : > { %v2870_v30 = vpop.permute.xlu2 %563  ;;  %v2872_v35 = vpop.permute.xlu1 %543 }
  0x9e   : > { %4452 = vst [vmem:[#allocation15_spill] sm:$0xff] %v2870_v30  ;;  %v2874_v44 = vpop.permute.xlu0 %541 }
  0x9f   : > { %4453 = vst [vmem:[#allocation16_spill] sm:$0xff] %v2872_v35 }
  0xa0   : > { %4454 = vst [vmem:[#allocation17_spill] sm:$0xff] %v2874_v44 }
  0xa3   : > { %699 = vrot.lane.b32.xlu2 %v2877_v48, %s2535_s21  ;;  %697 = vrot.lane.b32.xlu1 %v2880_v40, %s2535_s21 }
  0xa4   : > { %695 = vrot.lane.b32.xlu0 %v2883_v62, %s2535_s21 }
  0xa5   : > { %v2891_v35 = vpop.permute.xlu2 %569  ;;  %v2893_v44 = vpop.permute.xlu1 %549 }
  0xa6   : > { %4455 = vst [vmem:[#allocation18_spill] sm:$0xff] %v2891_v35  ;;  %v2895_v50 = vpop.permute.xlu0 %547 }
  0xa7   : > { %4456 = vst [vmem:[#allocation19_spill] sm:$0xff] %v2893_v44  ;;  %v2922_v44 = vld [vmem:[%s2586_s19 + $0x15a] sm:$0xff] }
  0xa8   : > { %4457 = vst [vmem:[#allocation20_spill] sm:$0xff] %v2895_v50 }
  0xa9   : > { %4463 = vst [vmem:[#allocation26_spill] sm:$0xff] %v2922_v44 }
  0xab   : > { %705 = vrot.lane.b32.xlu2 %v2898_v61, %s2535_s21  ;;  %703 = vrot.lane.b32.xlu1 %v2901_v36, %s2535_s21  ;;  %v2961_v61 = vld [vmem:[%s2586_s19 + $0x38] sm:$0xff] }
  0xac   : > { %701 = vrot.lane.b32.xlu0 %v2904_v56, %s2535_s21  ;;  %4474 = vst [vmem:[#allocation37_spill] sm:$0xff] %v2961_v61 }
  0xad   : > { %v2912_v35 = vpop.permute.xlu2 %575  ;;  %v2914_v50 = vpop.permute.xlu1 %555 }
  0xae   : > { %4459 = vst [vmem:[#allocation22_spill] sm:$0xff] %v2912_v35  ;;  %v2916_v30 = vpop.permute.xlu0 %553 }
  0xaf   : > { %4460 = vst [vmem:[#allocation23_spill] sm:$0xff] %v2914_v50 }
  0xb0   : > { %4461 = vst [vmem:[#allocation24_spill] sm:$0xff] %v2916_v30 }
  0xb3   : > { %711 = vrot.lane.b32.xlu2 %v2919_v60, %s2535_s21  ;;  %709 = vrot.lane.b32.xlu1 %v2922_v44, %s2535_s21  ;;  %v2946_v60 = vld [vmem:[%s2586_s19 + $0x20] sm:$0xff]  ;;  %v2967_v44 = vld [vmem:[%s2586_s19 + $0x30] sm:$0xff] }
  0xb4   : > { %707 = vrot.lane.b32.xlu0 %v2925_v54, %s2535_s21  ;;  %4470 = vst [vmem:[#allocation33_spill] sm:$0xff] %v2946_v60  ;;  %v2964_v54 = vld [vmem:[%s2586_s19 + $0x48] sm:$0xff] }
  0xb5   : > { %v2933_v35 = vpop.permute.xlu2 %581  ;;  %v2935_v50 = vpop.permute.xlu1 %561  ;;  %4475 = vst [vmem:[#allocation38_spill] sm:$0xff] %v2964_v54 }
  0xb6   : > { %4465 = vst [vmem:[#allocation28_spill] sm:$0xff] %v2933_v35  ;;  %v2937_v30 = vpop.permute.xlu0 %559 }
  0xb7   : > { %4466 = vst [vmem:[#allocation29_spill] sm:$0xff] %v2935_v50 }
  0xb8   : > { %4467 = vst [vmem:[#allocation30_spill] sm:$0xff] %v2937_v30 }
  0xb9   : > { %4476 = vst [vmem:[#allocation39_spill] sm:$0xff] %v2967_v44 }
  0xbb   : > { %781 = vrot.lane.b32.xlu2 %v2946_v60, %s2536_s22  ;;  %779 = vrot.lane.b32.xlu1 %v2943_v55, %s2536_s22  ;;  %v205_v60 = vld [vmem:[%s2586_s19 + $0x60] sm:$0xff] }
  0xbc   : > { %713 = vrot.lane.b32.xlu0 %v2940_v49, %s2535_s21  ;;  %v2986_v49 = vld [vmem:[%s2586_s19 + $0x50] sm:$0xff] }
  0xbd   : > { %v2954_v35 = vpop.permute.xlu2 %651  ;;  %v2956_v50 = vpop.permute.xlu1 %567  ;;  %4481 = vst [vmem:[#allocation44_spill] sm:$0xff] %v2986_v49 }
  0xbe   : > { %4471 = vst [vmem:[#allocation34_spill] sm:$0xff] %v2954_v35  ;;  %v2958_v30 = vpop.permute.xlu0 %565 }
  0xbf   : > { %4472 = vst [vmem:[#allocation35_spill] sm:$0xff] %v2956_v50  ;;  %v2983_v50 = vld [vmem:[%s2586_s19 + $0x68] sm:$0xff] }
  0xc0   : > { %4473 = vst [vmem:[#allocation36_spill] sm:$0xff] %v2958_v30 }
  0xc1   : > { %4480 = vst [vmem:[#allocation43_spill] sm:$0xff] %v2983_v50 }
  0xc3   : > { %787 = vrot.lane.b32.xlu2 %v2964_v54, %s2536_s22  ;;  %785 = vrot.lane.b32.xlu1 %v2961_v61, %s2536_s22 }
  0xc4   : > { %783 = vrot.lane.b32.xlu0 %v2967_v44, %s2536_s22 }
  0xc5   : > { %v2975_v35 = vpop.permute.xlu2 %657  ;;  %v2977_v30 = vpop.permute.xlu1 %573 }
  0xc6   : > { %4477 = vst [vmem:[#allocation40_spill] sm:$0xff] %v2975_v35  ;;  %v2979_v55 = vpop.permute.xlu0 %571  ;;  %v3004_v35 = vld [vmem:[%s2586_s19 + $0x78] sm:$0xff] }
  0xc7   : > { %4478 = vst [vmem:[#allocation41_spill] sm:$0xff] %v2977_v30  ;;  %v3001_v30 = vld [vmem:[%s2586_s19 + $0x90] sm:$0xff] }
  0xc8   : > { %4479 = vst [vmem:[#allocation42_spill] sm:$0xff] %v2979_v55  ;;  %v208_v55 = vld [vmem:[%s2586_s19 + $0x80] sm:$0xff] }
  0xc9   : > { %4485 = vst [vmem:[#allocation48_spill] sm:$0xff] %v3001_v30 }
  0xca   : > { %4486 = vst [vmem:[#allocation49_spill] sm:$0xff] %v3004_v35 }
  0xcb   : > { %793 = vrot.lane.b32.xlu2 %v2983_v50, %s2536_s22  ;;  %791 = vrot.lane.b32.xlu1 %v205_v60, %s2536_s22  ;;  %v3018_v50 = vld [vmem:[%s2586_s19 + $0xa8] sm:$0xff] }
  0xcc   : > { %789 = vrot.lane.b32.xlu0 %v2986_v49, %s2536_s22  ;;  %4490 = vst [vmem:[#allocation53_spill] sm:$0xff] %v3018_v50  ;;  %v3024_v49 = vld [vmem:[%s2586_s19 + $0x98] sm:$0xff] }
  0xcd   : > { %v2993_v61 = vpop.permute.xlu2 %663  ;;  %v2995_v44 = vpop.permute.xlu1 %579  ;;  %4492 = vst [vmem:[#allocation55_spill] sm:$0xff] %v3024_v49 }
  0xce   : > { %4482 = vst [vmem:[#allocation45_spill] sm:$0xff] %v2993_v61  ;;  %v2997_v54 = vpop.permute.xlu0 %577 }
  0xcf   : > { %4483 = vst [vmem:[#allocation46_spill] sm:$0xff] %v2995_v44 }
  0xd0   : > { %4484 = vst [vmem:[#allocation47_spill] sm:$0xff] %v2997_v54  ;;  %v3021_v54 = vld [vmem:[%s2586_s19 + $0xb0] sm:$0xff] }
  0xd1   : > { %4491 = vst [vmem:[#allocation54_spill] sm:$0xff] %v3021_v54 }
  0xd3   : > { %799 = vrot.lane.b32.xlu2 %v3001_v30, %s2536_s22  ;;  %797 = vrot.lane.b32.xlu1 %v208_v55, %s2536_s22  ;;  %v3039_v30 = vld [vmem:[%s2586_s19 + $0xc8] sm:$0xff] }
  0xd4   : > { %795 = vrot.lane.b32.xlu0 %v3004_v35, %s2536_s22  ;;  %4496 = vst [vmem:[#allocation59_spill] sm:$0xff] %v3039_v30  ;;  %v3045_v35 = vld [vmem:[%s2586_s19 + $0xc0] sm:$0xff] }
  0xd5   : > { %v3011_v60 = vpop.permute.xlu2 %669  ;;  %v3013_v61 = vpop.permute.xlu1 %585  ;;  %4498 = vst [vmem:[#allocation61_spill] sm:$0xff] %v3045_v35 }
  0xd6   : > { %4487 = vst [vmem:[#allocation50_spill] sm:$0xff] %v3011_v60  ;;  %v3015_v44 = vpop.permute.xlu0 %583 }
  0xd7   : > { %4488 = vst [vmem:[#allocation51_spill] sm:$0xff] %v3013_v61  ;;  %v3042_v61 = vld [vmem:[%s2586_s19 + $0xd8] sm:$0xff] }
  0xd8   : > { %4489 = vst [vmem:[#allocation52_spill] sm:$0xff] %v3015_v44 }
  0xd9   : > { %4497 = vst [vmem:[#allocation60_spill] sm:$0xff] %v3042_v61 }
  0xdb   : > { %805 = vrot.lane.b32.xlu2 %v3021_v54, %s2536_s22  ;;  %803 = vrot.lane.b32.xlu1 %v3018_v50, %s2536_s22  ;;  %v3060_v54 = vld [vmem:[%s2586_s19 + $0xf0] sm:$0xff] }
  0xdc   : > { %801 = vrot.lane.b32.xlu0 %v3024_v49, %s2536_s22  ;;  %4502 = vst [vmem:[#allocation65_spill] sm:$0xff] %v3060_v54  ;;  %v3066_v49 = vld [vmem:[%s2586_s19 + $0xe0] sm:$0xff] }
  0xdd   : > { %v3032_v55 = vpop.permute.xlu2 %675  ;;  %v3034_v60 = vpop.permute.xlu1 %655  ;;  %4504 = vst [vmem:[#allocation67_spill] sm:$0xff] %v3066_v49 }
  0xde   : > { %4493 = vst [vmem:[#allocation56_spill] sm:$0xff] %v3032_v55  ;;  %v3036_v44 = vpop.permute.xlu0 %653 }
  0xdf   : > { %4494 = vst [vmem:[#allocation57_spill] sm:$0xff] %v3034_v60  ;;  %v3063_v60 = vld [vmem:[%s2586_s19 + $0xf8] sm:$0xff] }
  0xe0   : > { %4495 = vst [vmem:[#allocation58_spill] sm:$0xff] %v3036_v44 }
  0xe1   : > { %4503 = vst [vmem:[#allocation66_spill] sm:$0xff] %v3063_v60 }
  0xe3   : > { %811 = vrot.lane.b32.xlu2 %v3042_v61, %s2536_s22  ;;  %809 = vrot.lane.b32.xlu1 %v3039_v30, %s2536_s22  ;;  %v3081_v61 = vld [vmem:[%s2586_s19 + $0x110] sm:$0xff] }
  0xe4   : > { %807 = vrot.lane.b32.xlu0 %v3045_v35, %s2536_s22  ;;  %4508 = vst [vmem:[#allocation71_spill] sm:$0xff] %v3081_v61  ;;  %v3087_v35 = vld [vmem:[%s2586_s19 + $0x108] sm:$0xff] }
  0xe5   : > { %v3053_v55 = vpop.permute.xlu2 %681  ;;  %v3055_v44 = vpop.permute.xlu1 %661  ;;  %4510 = vst [vmem:[#allocation73_spill] sm:$0xff] %v3087_v35 }
  0xe6   : > { %4499 = vst [vmem:[#allocation62_spill] sm:$0xff] %v3053_v55  ;;  %v3057_v50 = vpop.permute.xlu0 %659  ;;  %v3084_v55 = vld [vmem:[%s2586_s19 + $0x120] sm:$0xff] }
  0xe7   : > { %4500 = vst [vmem:[#allocation63_spill] sm:$0xff] %v3055_v44 }
  0xe8   : > { %4501 = vst [vmem:[#allocation64_spill] sm:$0xff] %v3057_v50 }
  0xe9   : > { %4509 = vst [vmem:[#allocation72_spill] sm:$0xff] %v3084_v55 }
  0xeb   : > { %817 = vrot.lane.b32.xlu2 %v3063_v60, %s2536_s22  ;;  %815 = vrot.lane.b32.xlu1 %v3060_v54, %s2536_s22  ;;  %v3102_v60 = vld [vmem:[%s2586_s19 + $0x138] sm:$0xff] }
  0xec   : > { %813 = vrot.lane.b32.xlu0 %v3066_v49, %s2536_s22  ;;  %4514 = vst [vmem:[#allocation77_spill] sm:$0xff] %v3102_v60  ;;  %v3108_v49 = vld [vmem:[%s2586_s19 + $0x128] sm:$0xff] }
  0xed   : > { %v3074_v44 = vpop.permute.xlu2 %687  ;;  %v3076_v50 = vpop.permute.xlu1 %667  ;;  %4516 = vst [vmem:[#allocation79_spill] sm:$0xff] %v3108_v49 }
  0xee   : > { %4505 = vst [vmem:[#allocation68_spill] sm:$0xff] %v3074_v44  ;;  %v3078_v30 = vpop.permute.xlu0 %665  ;;  %v3105_v44 = vld [vmem:[%s2586_s19 + $0x140] sm:$0xff] }
  0xef   : > { %4506 = vst [vmem:[#allocation69_spill] sm:$0xff] %v3076_v50 }
  0xf0   : > { %4507 = vst [vmem:[#allocation70_spill] sm:$0xff] %v3078_v30 }
  0xf1   : > { %4515 = vst [vmem:[#allocation78_spill] sm:$0xff] %v3105_v44 }
  0xf3   : > { %823 = vrot.lane.b32.xlu2 %v3084_v55, %s2536_s22  ;;  %821 = vrot.lane.b32.xlu1 %v3081_v61, %s2536_s22  ;;  %v3126_v55 = vld [vmem:[%s2586_s19 + $0x168] sm:$0xff] }
  0xf4   : > { %819 = vrot.lane.b32.xlu0 %v3087_v35, %s2536_s22  ;;  %4521 = vst [vmem:[#allocation84_spill] sm:$0xff] %v3126_v55  ;;  %v3129_v35 = vld [vmem:[%s2586_s19 + $0x150] sm:$0xff] }
  0xf5   : > { %v3095_v50 = vpop.permute.xlu2 %693  ;;  %v3097_v30 = vpop.permute.xlu1 %673 }
  0xf6   : > { %4511 = vst [vmem:[#allocation74_spill] sm:$0xff] %v3095_v50  ;;  %v3099_v54 = vpop.permute.xlu0 %671  ;;  %v3123_v50 = vld [vmem:[%s2586_s19 + $0x158] sm:$0xff] }
  0xf7   : > { %4512 = vst [vmem:[#allocation75_spill] sm:$0xff] %v3097_v30 }
  0xf8   : > { %4513 = vst [vmem:[#allocation76_spill] sm:$0xff] %v3099_v54 }
  0xf9   : > { %4520 = vst [vmem:[#allocation83_spill] sm:$0xff] %v3123_v50 }
  0xfb   : > { %829 = vrot.lane.b32.xlu2 %v3105_v44, %s2536_s22  ;;  %827 = vrot.lane.b32.xlu1 %v3102_v60, %s2536_s22  ;;  %v2260_v44 = vld [vmem:[%s2586_s19 + $0x188] sm:$0xff] }
  0xfc   : > { %825 = vrot.lane.b32.xlu0 %v3108_v49, %s2536_s22  ;;  %v3148_v49 = vld [vmem:[%s2586_s19 + $0x170] sm:$0xff] }
  0xfd   : > { %v3116_v30 = vpop.permute.xlu2 %699  ;;  %v3118_v54 = vpop.permute.xlu1 %679 }
  0xfe   : > { %4517 = vst [vmem:[#allocation80_spill] sm:$0xff] %v3116_v30  ;;  %v3120_v61 = vpop.permute.xlu0 %677  ;;  %v3145_v30 = vld [vmem:[%s2586_s19 + $0x180] sm:$0xff] }
  0xff   : > { %4518 = vst [vmem:[#allocation81_spill] sm:$0xff] %v3118_v54 }
 0x100   : > { %4519 = vst [vmem:[#allocation82_spill] sm:$0xff] %v3120_v61 }
 0x101   : > { %4524 = vst [vmem:[#allocation87_spill] sm:$0xff] %v3145_v30 }
 0x103   : > { %835 = vrot.lane.b32.xlu2 %v3126_v55, %s2536_s22  ;;  %833 = vrot.lane.b32.xlu1 %v3123_v50, %s2536_s22 }
 0x104   : > { %831 = vrot.lane.b32.xlu0 %v3129_v35, %s2536_s22 }
 0x105   : > { %v3137_v60 = vpop.permute.xlu2 %705  ;;  %v3139_v54 = vpop.permute.xlu1 %685 }
 0x106   : > { %4522 = vst [vmem:[#allocation85_spill] sm:$0xff] %v3139_v54  ;;  %v3141_v61 = vpop.permute.xlu0 %683 }
 0x107   : > { %4523 = vst [vmem:[#allocation86_spill] sm:$0xff] %v3141_v61 }
 0x10b   : > { %841 = vrot.lane.b32.xlu2 %v2260_v44, %s2536_s22  ;;  %839 = vrot.lane.b32.xlu1 %v3145_v30, %s2536_s22 }
 0x10c   : > { %837 = vrot.lane.b32.xlu0 %v3148_v49, %s2536_s22 }
 0x10d   : > { %v3155_v55 = vpop.permute.xlu2 %711  ;;  %v3157_v50 = vpop.permute.xlu1 %691 }
 0x10e   : > { %v3159_v54 = vpop.permute.xlu0 %689 }
 0x113   : > { %911 = vrot.lane.b32.xlu2 %v2589_v0, %s2537_s23  ;;  %909 = vrot.lane.b32.xlu1 %v2604_v4, %s2537_s23 }
 0x114   : > { %907 = vrot.lane.b32.xlu0 %v2592_v1, %s2537_s23 }
 0x115   : > { %v3167_v44 = vpop.permute.xlu2 %781  ;;  %v3169_v30 = vpop.permute.xlu1 %697 }
 0x116   : > { %v3171_v61 = vpop.permute.xlu0 %695 }
 0x11b   : > { %917 = vrot.lane.b32.xlu2 %v2616_v7, %s2537_s23  ;;  %915 = vrot.lane.b32.xlu1 %v2619_v8, %s2537_s23 }
 0x11c   : > { %913 = vrot.lane.b32.xlu0 %v2601_v3, %s2537_s23 }
 0x11d   : > { %v3179_v0 = vpop.permute.xlu2 %787  ;;  %v3181_v4 = vpop.permute.xlu1 %703 }
 0x11e   : > { %v3183_v1 = vpop.permute.xlu0 %701 }
 0x123   : > { %923 = vrot.lane.b32.xlu2 %v2631_v10, %s2537_s23  ;;  %921 = vrot.lane.b32.xlu1 %v2634_v11, %s2537_s23 }
 0x124   : > { %919 = vrot.lane.b32.xlu0 %v2613_v6, %s2537_s23 }
 0x125   : > { %v3191_v7 = vpop.permute.xlu2 %793  ;;  %v3193_v8 = vpop.permute.xlu1 %709 }
 0x126   : > { %v3195_v3 = vpop.permute.xlu0 %707 }
 0x12b   : > { %929 = vrot.lane.b32.xlu2 %v2646_v13, %s2537_s23  ;;  %927 = vrot.lane.b32.xlu1 %v2649_v14, %s2537_s23 }
 0x12c   : > { %925 = vrot.lane.b32.xlu0 %v2628_v9, %s2537_s23 }
 0x12d   : > { %v3203_v10 = vpop.permute.xlu2 %799  ;;  %v3205_v11 = vpop.permute.xlu1 %779 }
 0x12e   : > { %4525 = vst [vmem:[#allocation88_spill] sm:$0xff] %v3203_v10  ;;  %v3207_v6 = vpop.permute.xlu0 %713 }
 0x12f   : > { %4526 = vst [vmem:[#allocation89_spill] sm:$0xff] %v3205_v11 }
 0x133   : > { %935 = vrot.lane.b32.xlu2 %v2661_v16, %s2537_s23  ;;  %933 = vrot.lane.b32.xlu1 %v2664_v17, %s2537_s23 }
 0x134   : > { %931 = vrot.lane.b32.xlu0 %v2643_v12, %s2537_s23 }
 0x135   : > { %v3215_v13 = vpop.permute.xlu2 %805  ;;  %v3217_v14 = vpop.permute.xlu1 %785 }
 0x136   : > { %v3219_v9 = vpop.permute.xlu0 %783 }
 0x13b   : > { %941 = vrot.lane.b32.xlu2 %v2676_v19, %s2537_s23  ;;  %939 = vrot.lane.b32.xlu1 %v2679_v20, %s2537_s23 }
 0x13c   : > { %937 = vrot.lane.b32.xlu0 %v2658_v15, %s2537_s23 }
 0x13d   : > { %v3227_v16 = vpop.permute.xlu2 %811  ;;  %v3229_v17 = vpop.permute.xlu1 %791 }
 0x13e   : > { %4527 = vst [vmem:[#allocation90_spill] sm:$0xff] %v3229_v17  ;;  %v3231_v12 = vpop.permute.xlu0 %789  ;;  %v3425_v17 = vld [vmem:[%s2586_s19 + $0x18a] sm:$0xff] }
 0x13f   : > { %4528 = vst [vmem:[#allocation91_spill] sm:$0xff] %v3231_v12  ;;  %v2325_v12 = vld [vmem:[%s2586_s19 + $0x30] sm:$0xff] }
 0x143   : > { %947 = vrot.lane.b32.xlu2 %v2691_v22, %s2537_s23  ;;  %945 = vrot.lane.b32.xlu1 %v2694_v23, %s2537_s23 }
 0x144   : > { %943 = vrot.lane.b32.xlu0 %v2673_v18, %s2537_s23 }
 0x145   : > { %v3239_v19 = vpop.permute.xlu2 %817  ;;  %v3241_v20 = vpop.permute.xlu1 %797 }
 0x146   : > { %4529 = vst [vmem:[#allocation92_spill] sm:$0xff] %v3241_v20  ;;  %v3243_v15 = vpop.permute.xlu0 %795  ;;  %v3282_v20 = vld [vmem:[%s2586_s19 + $0x189] sm:$0xff] }
 0x147   : > { %4530 = vst [vmem:[#allocation93_spill] sm:$0xff] %v3243_v15  ;;  %v3285_v15 = vld [vmem:[%s2586_s19 + $0x181] sm:$0xff] }
 0x148   : > { %4534 = vst [vmem:[#allocation97_spill] sm:$0xff] %v3282_v20 }
 0x149   : > { %4535 = vst [vmem:[#allocation98_spill] sm:$0xff] %v3285_v15 }
 0x14b   : > { %953 = vrot.lane.b32.xlu2 %v2706_v25, %s2537_s23  ;;  %951 = vrot.lane.b32.xlu1 %v2709_v26, %s2537_s23 }
 0x14c   : > { %949 = vrot.lane.b32.xlu0 %v2688_v21, %s2537_s23 }
 0x14d   : > { %v3251_v22 = vpop.permute.xlu2 %823  ;;  %v3253_v18 = vpop.permute.xlu1 %803 }
 0x14e   : > { %4531 = vst [vmem:[#allocation94_spill] sm:$0xff] %v3253_v18  ;;  %v3255_v23 = vpop.permute.xlu0 %801 }
 0x14f   : > { %4532 = vst [vmem:[#allocation95_spill] sm:$0xff] %v3255_v23  ;;  %v3408_v23 = vld [vmem:[%s2586_s19 + $0x182] sm:$0xff] }
 0x153   : > { %959 = vrot.lane.b32.xlu2 %v2721_v28, %s2537_s23  ;;  %957 = vrot.lane.b32.xlu1 %v2724_v29, %s2537_s23 }
 0x154   : > { %955 = vrot.lane.b32.xlu0 %v2703_v24, %s2537_s23 }
 0x155   : > { %v3263_v25 = vpop.permute.xlu2 %829  ;;  %v3265_v21 = vpop.permute.xlu1 %809 }
 0x156   : > { %v3267_v26 = vpop.permute.xlu0 %807 }
 0x15b   : > { %965 = vrot.lane.b32.xlu2 %v2734_v31, %s2537_s23  ;;  %963 = vrot.lane.b32.xlu1 %v2737_v32, %s2537_s23 }
 0x15c   : > { %961 = vrot.lane.b32.xlu0 %v2718_v27, %s2537_s23 }
 0x15d   : > { %v3275_v28 = vpop.permute.xlu2 %835  ;;  %v3277_v29 = vpop.permute.xlu1 %815 }
 0x15e   : > { %4533 = vst [vmem:[#allocation96_spill] sm:$0xff] %v3275_v28  ;;  %v3279_v24 = vpop.permute.xlu0 %813  ;;  %v4559_v28 = vld [vmem:[#allocation41_spill] sm:$0xff] }
 0x163   : > { %1035 = vrot.lane.b32.xlu2 %v2748_v34, %s2538_s24  ;;  %969 = vrot.lane.b32.xlu1 %v3282_v20, %s2537_s23 }
 0x164   : > { %967 = vrot.lane.b32.xlu0 %v3285_v15, %s2537_s23 }
 0x165   : > { %v3293_v27 = vpop.permute.xlu2 %841  ;;  %v3295_v31 = vpop.permute.xlu1 %821 }
 0x166   : > { %v3297_v32 = vpop.permute.xlu0 %819 }
 0x16b   : > { %1041 = vrot.lane.b32.xlu2 %v2762_v38, %s2538_s24  ;;  %1039 = vrot.lane.b32.xlu1 %v2765_v39, %s2538_s24 }
 0x16c   : > { %1037 = vrot.lane.b32.xlu0 %v2745_v33, %s2538_s24 }
 0x16d   : > { %v3305_v34 = vpop.permute.xlu2 %911  ;;  %v3307_v20 = vpop.permute.xlu1 %827 }
 0x16e   : > { %v3309_v15 = vpop.permute.xlu0 %825 }
 0x173   : > { %1047 = vrot.lane.b32.xlu2 %v2779_v42, %s2538_s24  ;;  %1045 = vrot.lane.b32.xlu1 %v2782_v43, %s2538_s24 }
 0x174   : > { %1043 = vrot.lane.b32.xlu0 %v2759_v37, %s2538_s24 }
 0x175   : > { %v3317_v38 = vpop.permute.xlu2 %917  ;;  %v3319_v39 = vpop.permute.xlu1 %833 }
 0x176   : > { %4536 = vst [vmem:[#allocation99_spill] sm:$0xff] %v3317_v38  ;;  %v3321_v33 = vpop.permute.xlu0 %831 }
 0x17b   : > { %1053 = vrot.lane.b32.xlu2 %v2796_v46, %s2538_s24  ;;  %1051 = vrot.lane.b32.xlu1 %v2799_v47, %s2538_s24 }
 0x17c   : > { %1049 = vrot.lane.b32.xlu0 %v2776_v41, %s2538_s24 }
 0x17d   : > { %v3329_v42 = vpop.permute.xlu2 %923  ;;  %v3331_v43 = vpop.permute.xlu1 %839 }
 0x17e   : > { %4537 = vst [vmem:[#allocation100_spill] sm:$0xff] %v3329_v42  ;;  %v3333_v37 = vpop.permute.xlu0 %837  ;;  %v4545_v42 = vld [vmem:[#allocation26_spill] sm:$0xff] }
 0x17f   : > { %4548 = vst [vmem:[#allocation26_spill] sm:$0xff] %v3408_v23 }
 0x183   : > { %1059 = vrot.lane.b32.xlu2 %v2817_v52, %s2538_s24  ;;  %1057 = vrot.lane.b32.xlu1 %v2820_v53, %s2538_s24 }
 0x184   : > { %1055 = vrot.lane.b32.xlu0 %v2793_v45, %s2538_s24 }
 0x185   : > { %v3341_v46 = vpop.permute.xlu2 %929  ;;  %v3343_v47 = vpop.permute.xlu1 %909 }
 0x186   : > { %4538 = vst [vmem:[#allocation101_spill] sm:$0xff] %v3341_v46  ;;  %v3345_v41 = vpop.permute.xlu0 %907 }
 0x187   : > { %4539 = vst [vmem:[#allocation102_spill] sm:$0xff] %v3345_v41 }
 0x18b   : > { %1065 = vrot.lane.b32.xlu2 %v2838_v58, %s2538_s24  ;;  %1063 = vrot.lane.b32.xlu1 %v2841_v59, %s2538_s24 }
 0x18c   : > { %1061 = vrot.lane.b32.xlu0 %v2814_v51, %s2538_s24 }
 0x18d   : > { %v3353_v52 = vpop.permute.xlu2 %935  ;;  %v3355_v53 = vpop.permute.xlu1 %915 }
 0x18e   : > { %v3357_v45 = vpop.permute.xlu0 %913 }
 0x193   : > { %1071 = vrot.lane.b32.xlu2 %v2859_v2, %s2538_s24  ;;  %1069 = vrot.lane.b32.xlu1 %v2862_v5, %s2538_s24 }
 0x194   : > { %1067 = vrot.lane.b32.xlu0 %v2835_v57, %s2538_s24 }
 0x195   : > { %v3365_v58 = vpop.permute.xlu2 %941  ;;  %v3367_v59 = vpop.permute.xlu1 %921 }
 0x196   : > { %4540 = vst [vmem:[#allocation103_spill] sm:$0xff] %v3367_v59  ;;  %v3369_v51 = vpop.permute.xlu0 %919  ;;  %v4560_v59 = vld [vmem:[#allocation79_spill] sm:$0xff] }
 0x197   : > { %4541 = vst [vmem:[#allocation104_spill] sm:$0xff] %v3369_v51  ;;  %v2326_v51 = vld [vmem:[%s2586_s19 + $0x38] sm:$0xff] }
 0x19b   : > { %1077 = vrot.lane.b32.xlu2 %v2880_v40, %s2538_s24  ;;  %1075 = vrot.lane.b32.xlu1 %v2883_v62, %s2538_s24 }
 0x19c   : > { %1073 = vrot.lane.b32.xlu0 %v2856_v63, %s2538_s24 }
 0x19d   : > { %v3377_v2 = vpop.permute.xlu2 %947  ;;  %v3379_v5 = vpop.permute.xlu1 %927 }
 0x19e   : > { %4542 = vst [vmem:[#allocation105_spill] sm:$0xff] %v3379_v5  ;;  %v3381_v57 = vpop.permute.xlu0 %925  ;;  %v4554_v5 = vld [vmem:[#allocation73_spill] sm:$0xff] }
 0x19f   : > { %4543 = vst [vmem:[#allocation106_spill] sm:$0xff] %v3381_v57 }
 0x1a3   : > { %1083 = vrot.lane.b32.xlu2 %v2901_v36, %s2538_s24  ;;  %1081 = vrot.lane.b32.xlu1 %v2904_v56, %s2538_s24  ;;  %v4546_v36 = vld [vmem:[#allocation27_spill] sm:$0xff]  ;;  %v4547_v56 = vld [vmem:[#allocation21_spill] sm:$0xff] }
 0x1a4   : > { %1079 = vrot.lane.b32.xlu0 %v2877_v48, %s2538_s24  ;;  %4552 = vst [vmem:[#allocation21_spill] sm:$0xff] %v3425_v17 }
 0x1a5   : > { %v3389_v40 = vpop.permute.xlu2 %953  ;;  %v3391_v62 = vpop.permute.xlu1 %933 }
 0x1a6   : > { %v3393_v63 = vpop.permute.xlu0 %931 }
 0x1a7   : > { %4544 = vst [vmem:[#allocation107_spill] sm:$0xff] %v3393_v63  ;;  %v4549_v63 = vld [vmem:[#allocation31_spill] sm:$0xff] }
 0x1ab   : > { %1089 = vrot.lane.b32.xlu2 %v4545_v42, %s2538_s24  ;;  %1087 = vrot.lane.b32.xlu1 %v4546_v36, %s2538_s24  ;;  %v4550_v42 = vld [vmem:[#allocation25_spill] sm:$0xff] }
 0x1ac   : > { %1085 = vrot.lane.b32.xlu0 %v4547_v56, %s2538_s24 }
 0x1ad   : > { %v3401_v57 = vpop.permute.xlu2 %959  ;;  %v3403_v48 = vpop.permute.xlu1 %939 }
 0x1ae   : > { %v3405_v46 = vpop.permute.xlu0 %937 }
 0x1b3   : > { %1095 = vrot.lane.b32.xlu2 %v3408_v23, %s2538_s24  ;;  %1093 = vrot.lane.b32.xlu1 %v4549_v63, %s2538_s24  ;;  %v4553_v23 = vld [vmem:[#allocation35_spill] sm:$0xff] }
 0x1b4   : > { %1091 = vrot.lane.b32.xlu0 %v4550_v42, %s2538_s24  ;;  %v1538_v63 = vsel %vm1515_vm0, %v4554_v5, %v4553_v23  ;;  %v4556_v5 = vld [vmem:[#allocation10_spill] sm:$0xff] }
 0x1b5   : > { %v3416_v18 = vpop.permute.xlu2 %965  ;;  %v3418_v56 = vpop.permute.xlu1 %945  ;;  %v1571_v42 = vsel %vm1548_vm1, %v1538_v63, %v3171_v61  ;;  %v4558_v63 = vld [vmem:[#allocation40_spill] sm:$0xff] }
 0x1b6   : > { %4551 = vst [vmem:[#allocation27_spill] sm:$0xff] %v3416_v18  ;;  %v3420_v38 = vpop.permute.xlu0 %943  ;;  %v1604_v41 = vsel %vm1581_vm2, %v1571_v42, %v3251_v22  ;;  %v4557_v18 = vld [vmem:[#allocation33_spill] sm:$0xff]  ;;  %v1541_v22 = vsel %vm1515_vm0, %v4560_v59, %v4559_v28  ;;  %v4561_v42 = vld [vmem:[#allocation44_spill] sm:$0xff] }
 0x1b7   : > { %v1519_v61 = vsel %vm1515_vm0, %v4557_v18, %v4556_v5  ;;  %v1574_v18 = vsel %vm1548_vm1, %v1541_v22, %v3183_v1  ;;  %v4565_v28 = vld [vmem:[#allocation80_spill] sm:$0xff] }
 0x1bb   : > { %1165 = vrot.lane.b32.xlu2 %v2326_v51, %s2539_s25  ;;  %1163 = vrot.lane.b32.xlu1 %v2325_v12, %s2539_s25  ;;  %v2329_v12 = vld [vmem:[%s2586_s19 + $0x60] sm:$0xff] }
 0x1bc   : > { %1097 = vrot.lane.b32.xlu0 %v3425_v17, %s2538_s24  ;;  %v1552_v17 = vsel %vm1548_vm1, %v1519_v61, %v4558_v63  ;;  %v4564_v61 = vld [vmem:[#allocation38_spill] sm:$0xff] }
 0x1bd   : > { %v3438_v11 = vpop.permute.xlu2 %1035  ;;  %v952_v10 = vpop.permute.xlu1 %951  ;;  %v1585_v5 = vsel %vm1581_vm2, %v1552_v17, %v3217_v14 }
 0x1be   : > { %4555 = vst [vmem:[#allocation31_spill] sm:$0xff] %v3438_v11  ;;  %v3441_v23 = vsel %vm1614_vm3, %v1604_v41, %v952_v10  ;;  %v3443_v51 = vpop.permute.xlu0 %949  ;;  %v4562_v10 = vld [vmem:[#allocation42_spill] sm:$0xff]  ;;  %v4563_v41 = vld [vmem:[#allocation72_spill] sm:$0xff]  ;;  %v1618_v63 = vsel %vm1614_vm3, %v1585_v5, %v3357_v45  ;;  %v4566_v45 = vld [vmem:[#allocation49_spill] sm:$0xff] }
 0x1bf   : > { %v1540_v11 = vsel %vm1515_vm0, %v4563_v41, %v4562_v10  ;;  %v4568_v5 = vld [vmem:[#allocation78_spill] sm:$0xff] }
 0x1c0   : > { %v1573_v59 = vsel %vm1548_vm1, %v1540_v11, %v4565_v28  ;;  %v4569_v28 = vld [vmem:[#allocation43_spill] sm:$0xff] }
 0x1c1   : > { %v1606_v1 = vsel %vm1581_vm2, %v1573_v59, %v3307_v20 }
 0x1c3   : > { %1171 = vrot.lane.b32.xlu2 %v2329_v12, %s2539_s25  ;;  %1169 = vrot.lane.b32.xlu1 %v4561_v42, %s2539_s25  ;;  %v1607_v12 = vsel %vm1581_vm2, %v1574_v18, %v3263_v25  ;;  %v2332_v25 = vld [vmem:[%s2586_s19 + $0x80] sm:$0xff] }
 0x1c4   : > { %1167 = vrot.lane.b32.xlu0 %v4564_v61, %s2539_s25  ;;  %v4567_v18 = vld [vmem:[#allocation47_spill] sm:$0xff] }
 0x1c5   : > { %v1042_v10 = vpop.permute.xlu2 %1041  ;;  %v958_v41 = vpop.permute.xlu1 %957  ;;  %v1543_v20 = vsel %vm1515_vm0, %v4568_v5, %v4567_v18 }
 0x1c6   : > { %v3475_v14 = vsel %vm1647_vm4, %v1618_v63, %v1042_v10  ;;  %v3478_v17 = vsel %vm1614_vm3, %v1607_v12, %v958_v41  ;;  %v956_v11 = vpop.permute.xlu0 %955  ;;  %v1576_v59 = vsel %vm1548_vm1, %v1543_v20, %v3137_v60  ;;  %v4572_v60 = vld [vmem:[#allocation55_spill] sm:$0xff]  ;;  %v4573_v20 = vld [vmem:[#allocation48_spill] sm:$0xff] }
 0x1c7   : > { %v3481_v22 = vsel %vm1614_vm3, %v1606_v1, %v956_v11  ;;  %v1609_v10 = vsel %vm1581_vm2, %v1576_v59, %v3319_v39  ;;  %v2335_v11 = vld [vmem:[%s2586_s19 + $0xa8] sm:$0xff] }
 0x1cb   : > { %1177 = vrot.lane.b32.xlu2 %v2332_v25, %s2539_s25  ;;  %1175 = vrot.lane.b32.xlu1 %v4566_v45, %s2539_s25  ;;  %v4571_v25 = vld [vmem:[#allocation51_spill] sm:$0xff] }
 0x1cc   : > { %1173 = vrot.lane.b32.xlu0 %v4569_v28, %s2539_s25  ;;  %v1547_v18 = vsel %vm1515_vm0, %v3148_v49, %v4571_v25  ;;  %v4576_v25 = vld [vmem:[#allocation32_spill] sm:$0xff] }
 0x1cd   : > { %v3494_v12 = vpop.permute.xlu2 %1047  ;;  %v3496_v63 = vpop.permute.xlu1 %963  ;;  %v1580_v5 = vsel %vm1548_vm1, %v1547_v18, %v3207_v6  ;;  %v4577_v18 = vld [vmem:[#allocation57_spill] sm:$0xff] }
 0x1ce   : > { %4570 = vst [vmem:[#allocation25_spill] sm:$0xff] %v3494_v12  ;;  %v962_v41 = vpop.permute.xlu0 %961  ;;  %v1613_v39 = vsel %vm1581_vm2, %v1580_v5, %v3293_v27  ;;  %v4578_v27 = vld [vmem:[#allocation61_spill] sm:$0xff] }
 0x1cf   : > { %v3501_v1 = vsel %vm1614_vm3, %v1609_v10, %v962_v41  ;;  %v2338_v41 = vld [vmem:[%s2586_s19 + $0xc8] sm:$0xff] }
 0x1d3   : > { %1183 = vrot.lane.b32.xlu2 %v2335_v11, %s2539_s25  ;;  %1181 = vrot.lane.b32.xlu1 %v4572_v60, %s2539_s25  ;;  %v4575_v11 = vld [vmem:[#allocation7_spill] sm:$0xff] }
 0x1d4   : > { %1179 = vrot.lane.b32.xlu0 %v4573_v20, %s2539_s25  ;;  %v1518_v6 = vsel %vm1515_vm0, %v4576_v25, %v4575_v11 }
 0x1d5   : > { %v3516_v28 = vpop.permute.xlu2 %1053  ;;  %v970_v59 = vpop.permute.xlu1 %969  ;;  %v1551_v20 = vsel %vm1548_vm1, %v1518_v6, %v4577_v18  ;;  %v2341_v6 = vld [vmem:[%s2586_s19 + $0xf0] sm:$0xff]  ;;  %v4582_v18 = vld [vmem:[#allocation24_spill] sm:$0xff] }
 0x1d6   : > { %4574 = vst [vmem:[#allocation35_spill] sm:$0xff] %v3516_v28  ;;  %v3519_v49 = vsel %vm1614_vm3, %v1613_v39, %v970_v59  ;;  %v3521_v10 = vpop.permute.xlu0 %967  ;;  %v1584_v5 = vsel %vm1581_vm2, %v1551_v20, %v3219_v9  ;;  %v4579_v39 = vld [vmem:[#allocation54_spill] sm:$0xff] }
 0x1d7   : > { %v1617_v59 = vsel %vm1614_vm3, %v1584_v5, %v3305_v34  ;;  %v1531_v9 = vsel %vm1515_vm0, %v4579_v39, %v4582_v18  ;;  %v4583_v20 = vld [vmem:[#allocation62_spill] sm:$0xff]  ;;  %v4584_v34 = vld [vmem:[#allocation67_spill] sm:$0xff] }
 0x1d8   : > { %v1564_v12 = vsel %vm1548_vm1, %v1531_v9, %v4583_v20  ;;  %v2381_v18 = vld [vmem:[%s2586_s19 + $0x151] sm:$0xff] }
 0x1d9   : > { %v1597_v5 = vsel %vm1581_vm2, %v1564_v12, %v3265_v21  ;;  %v2373_v9 = vld [vmem:[%s2586_s19 + $0xf1] sm:$0xff]  ;;  %v4588_v12 = vld [vmem:[#allocation68_spill] sm:$0xff] }
 0x1da   : > { %v4587_v20 = vld [vmem:[#allocation30_spill] sm:$0xff] }
 0x1db   : > { %1189 = vrot.lane.b32.xlu2 %v2338_v41, %s2539_s25  ;;  %1187 = vrot.lane.b32.xlu1 %v4578_v27, %s2539_s25 }
 0x1dc   : > { %1185 = vrot.lane.b32.xlu0 %v4579_v39, %s2539_s25 }
 0x1dd   : > { %v3538_v28 = vpop.permute.xlu2 %1059  ;;  %v1040_v11 = vpop.permute.xlu1 %1039 }
 0x1de   : > { %4580 = vst [vmem:[#allocation73_spill] sm:$0xff] %v3538_v28  ;;  %v3541_v25 = vsel %vm1647_vm4, %v1617_v59, %v1040_v11  ;;  %v3543_v41 = vpop.permute.xlu0 %1037  ;;  %v4585_v59 = vld [vmem:[#allocation60_spill] sm:$0xff]  ;;  %v1630_v11 = vsel %vm1614_vm3, %v1597_v5, %v3405_v46 }
 0x1df   : > { %4581 = vst [vmem:[#allocation10_spill] sm:$0xff] %v3541_v25  ;;  %v1534_v21 = vsel %vm1515_vm0, %v4585_v59, %v4587_v20 }
 0x1e0   : > { %v1567_v25 = vsel %vm1548_vm1, %v1534_v21, %v4588_v12  ;;  %v4591_v21 = vld [vmem:[#allocation36_spill] sm:$0xff]  ;;  %v4592_v12 = vld [vmem:[#allocation66_spill] sm:$0xff] }
 0x1e1   : > { %v1600_v46 = vsel %vm1581_vm2, %v1567_v25, %v3277_v29  ;;  %v1537_v29 = vsel %vm1515_vm0, %v4592_v12, %v4591_v21  ;;  %v4593_v25 = vld [vmem:[#allocation74_spill] sm:$0xff] }
 0x1e3   : > { %1195 = vrot.lane.b32.xlu2 %v2341_v6, %s2539_s25  ;;  %1193 = vrot.lane.b32.xlu1 %v4584_v34, %s2539_s25 }
 0x1e4   : > { %1191 = vrot.lane.b32.xlu0 %v4585_v59, %s2539_s25 }
 0x1e5   : > { %v1066_v28 = vpop.permute.xlu2 %1065  ;;  %v3560_v61 = vpop.permute.xlu1 %1045 }
 0x1e6   : > { %v3563_v39 = vsel %vm1647_vm4, %v1630_v11, %v1066_v28  ;;  %v3565_v6 = vpop.permute.xlu0 %1043  ;;  %v1633_v28 = vsel %vm1614_vm3, %v1600_v46, %v3420_v38 }
 0x1e7   : > { %4586 = vst [vmem:[#allocation33_spill] sm:$0xff] %v3563_v39  ;;  %v1570_v39 = vsel %vm1548_vm1, %v1537_v29, %v4593_v25  ;;  %v4594_v25 = vld [vmem:[#allocation9_spill] sm:$0xff] }
 0x1e8   : > { %v1603_v38 = vsel %vm1581_vm2, %v1570_v39, %v3295_v31  ;;  %v4597_v39 = vld [vmem:[#allocation81_spill] sm:$0xff] }
 0x1e9   : > { %v1636_v46 = vsel %vm1614_vm3, %v1603_v38, %v3443_v51  ;;  %v4599_v38 = vld [vmem:[#allocation82_spill] sm:$0xff] }
 0x1eb   : > { %1339 = vrot.lane.b32.xlu2 %v2381_v18, %s2540_s26  ;;  %1323 = vrot.lane.b32.xlu1 %v2373_v9, %s2540_s26  ;;  %v2357_v18 = vld [vmem:[%s2586_s19 + $0x31] sm:$0xff] }
 0x1ec   : > { %1211 = vrot.lane.b32.xlu0 %v3129_v35, %s2539_s25  ;;  %v2405_v9 = vld [vmem:[%s2586_s19 + $0xf2] sm:$0xff] }
 0x1ed   : > { %v1072_v5 = vpop.permute.xlu2 %1071  ;;  %v3582_v11 = vpop.permute.xlu1 %1051 }
 0x1ee   : > { %4589 = vst [vmem:[#allocation40_spill] sm:$0xff] %v3582_v11  ;;  %v3585_v59 = vsel %vm1647_vm4, %v1633_v28, %v1072_v5  ;;  %v3587_v20 = vpop.permute.xlu0 %1049  ;;  %v4596_v11 = vld [vmem:[#allocation19_spill] sm:$0xff] }
 0x1ef   : > { %4590 = vst [vmem:[#allocation41_spill] sm:$0xff] %v3585_v59  ;;  %v4595_v59 = vld [vmem:[#allocation53_spill] sm:$0xff]  ;;  %v1529_v31 = vsel %vm1515_vm0, %v4572_v60, %v4596_v11 }
 0x1f3   : > { %1291 = vrot.lane.b32.xlu2 %v2357_v18, %s2540_s26  ;;  %1467 = vrot.lane.b32.xlu1 %v4546_v36, %s2541_s27  ;;  %v2365_v18 = vld [vmem:[%s2586_s19 + $0x91] sm:$0xff]  ;;  %v1530_v36 = vsel %vm1515_vm0, %v4595_v59, %v4594_v25 }
 0x1f4   : > { %1451 = vrot.lane.b32.xlu0 %v2405_v9, %s2541_s27  ;;  %v1563_v51 = vsel %vm1548_vm1, %v1530_v36, %v4597_v39  ;;  %v4598_v9 = vld [vmem:[#allocation83_spill] sm:$0xff]  ;;  %v2397_v39 = vld [vmem:[%s2586_s19 + $0x92] sm:$0xff] }
 0x1f5   : > { %v1078_v28 = vpop.permute.xlu2 %1077  ;;  %v3604_v5 = vpop.permute.xlu1 %1057  ;;  %v1596_v59 = vsel %vm1581_vm2, %v1563_v51, %v3267_v26  ;;  %v2389_v51 = vld [vmem:[%s2586_s19 + $0x32] sm:$0xff] }
 0x1f6   : > { %v3607_v21 = vsel %vm1647_vm4, %v1636_v46, %v1078_v28  ;;  %v3609_v29 = vpop.permute.xlu0 %1055  ;;  %v1562_v46 = vsel %vm1548_vm1, %v1529_v31, %v4599_v38  ;;  %v1629_v11 = vsel %vm1614_vm3, %v1596_v59, %v3353_v52  ;;  %v4600_v52 = vld [vmem:[#allocation12_spill] sm:$0xff]  ;;  %v4601_v38 = vld [vmem:[#allocation59_spill] sm:$0xff] }
 0x1f7   : > { %v1595_v60 = vsel %vm1581_vm2, %v1562_v46, %v3215_v13  ;;  %v2374_v13 = vld [vmem:[%s2586_s19 + $0xf9] sm:$0xff]  ;;  %v1533_v46 = vsel %vm1515_vm0, %v4601_v38, %v4600_v52 }
 0x1f8   : > { %v1628_v36 = vsel %vm1614_vm3, %v1595_v60, %v3391_v62  ;;  %v4602_v59 = vld [vmem:[#allocation23_spill] sm:$0xff] }
 0x1f9   : > { %v1532_v62 = vsel %vm1515_vm0, %v4578_v27, %v4602_v59  ;;  %v2382_v59 = vld [vmem:[%s2586_s19 + $0x159] sm:$0xff] }
 0x1fb   : > { %1213 = vrot.lane.b32.xlu2 %v4598_v9, %s2539_s25  ;;  %1197 = vrot.lane.b32.xlu1 %v4592_v12, %s2539_s25 }
 0x1fc   : > { %1307 = vrot.lane.b32.xlu0 %v2365_v18, %s2540_s26 }
 0x1fd   : > { %v1084_v28 = vpop.permute.xlu2 %1083  ;;  %v1064_v25 = vpop.permute.xlu1 %1063 }
 0x1fe   : > { %v3637_v12 = vsel %vm1647_vm4, %v3481_v22, %v1084_v28  ;;  %v3640_v31 = vsel %vm1647_vm4, %v1629_v11, %v1064_v25  ;;  %v1062_v26 = vpop.permute.xlu0 %1061  ;;  %v4603_v22 = vld [vmem:[#allocation85_spill] sm:$0xff]  ;;  %v4604_v11 = vld [vmem:[#allocation86_spill] sm:$0xff] }
 0x1ff   : > { %v3643_v18 = vsel %vm1647_vm4, %v1628_v36, %v1062_v26  ;;  %v1566_v60 = vsel %vm1548_vm1, %v1533_v46, %v4603_v22  ;;  %v1565_v28 = vsel %vm1548_vm1, %v1532_v62, %v4604_v11  ;;  %v2406_v46 = vld [vmem:[%s2586_s19 + $0xfa] sm:$0xff]  ;;  %v4606_v62 = vld [vmem:[#allocation65_spill] sm:$0xff] }
 0x200   : > { %v1599_v25 = vsel %vm1581_vm2, %v1566_v60, %v3279_v24  ;;  %v1598_v27 = vsel %vm1581_vm2, %v1565_v28, %v3227_v16  ;;  %v2414_v16 = vld [vmem:[%s2586_s19 + $0x15a] sm:$0xff]  ;;  %v4607_v60 = vld [vmem:[#allocation52_spill] sm:$0xff]  ;;  %v4609_v11 = vld [vmem:[#allocation29_spill] sm:$0xff] }
 0x201   : > { %v1632_v36 = vsel %vm1614_vm3, %v1599_v25, %v3365_v58  ;;  %v4605_v58 = vld [vmem:[#allocation15_spill] sm:$0xff]  ;;  %v1535_v28 = vsel %vm1515_vm0, %v4584_v34, %v4609_v11 }
 0x202   : > { %v1536_v22 = vsel %vm1515_vm0, %v4606_v62, %v4605_v58  ;;  %v4610_v58 = vld [vmem:[#allocation11_spill] sm:$0xff] }
 0x203   : > { %1325 = vrot.lane.b32.xlu2 %v2374_v13, %s2540_s26  ;;  %1435 = vrot.lane.b32.xlu1 %v2397_v39, %s2541_s27  ;;  %v1631_v13 = vsel %vm1614_vm3, %v1598_v27, %v3403_v48  ;;  %v4608_v48 = vld [vmem:[#allocation84_spill] sm:$0xff]  ;;  %v1569_v27 = vsel %vm1548_vm1, %v1536_v22, %v3157_v50  ;;  %v2358_v62 = vld [vmem:[%s2586_s19 + $0x39] sm:$0xff] }
 0x204   : > { %1419 = vrot.lane.b32.xlu0 %v2389_v51, %s2541_s27  ;;  %v4611_v22 = vld [vmem:[#allocation18_spill] sm:$0xff] }
 0x205   : > { %v1090_v26 = vpop.permute.xlu2 %1089  ;;  %v1070_v52 = vpop.permute.xlu1 %1069 }
 0x206   : > { %v3671_v39 = vsel %vm1647_vm4, %v3501_v1, %v1090_v26  ;;  %v3674_v38 = vsel %vm1647_vm4, %v1632_v36, %v1070_v52  ;;  %v1068_v24 = vpop.permute.xlu0 %1067  ;;  %v1546_v1 = vsel %vm1515_vm0, %v4608_v48, %v4607_v60  ;;  %v1568_v36 = vsel %vm1548_vm1, %v1535_v28, %v3159_v54  ;;  %v4612_v60 = vld [vmem:[#allocation71_spill] sm:$0xff] }
 0x207   : > { %v3677_v51 = vsel %vm1647_vm4, %v1631_v13, %v1068_v24  ;;  %v1579_v25 = vsel %vm1548_vm1, %v1546_v1, %v3155_v55  ;;  %v1602_v26 = vsel %vm1581_vm2, %v1569_v27, %v3297_v32  ;;  %v1601_v50 = vsel %vm1581_vm2, %v1568_v36, %v3239_v19  ;;  %v198_v24 = vld [vmem:[%s2586_s19 + $0x8] sm:$0xff]  ;;  %v4613_v1 = vld [vmem:[#allocation58_spill] sm:$0xff] }
 0x208   : > { %v1612_v34 = vsel %vm1581_vm2, %v1579_v25, %v3331_v43  ;;  %v1635_v55 = vsel %vm1614_vm3, %v1602_v26, %v3377_v2  ;;  %v1634_v32 = vsel %vm1614_vm3, %v1601_v50, %v3418_v56  ;;  %v2343_v2 = vld [vmem:[%s2586_s19 + $0x108] sm:$0xff]  ;;  %v1539_v56 = vsel %vm1515_vm0, %v4612_v60, %v4611_v22 }
 0x209   : > { %v1645_v52 = vsel %vm1614_vm3, %v1612_v34, %v3521_v10  ;;  %v1517_v10 = vsel %vm1515_vm0, %v198_v24, %v4610_v58  ;;  %v1572_v25 = vsel %vm1548_vm1, %v1539_v56, %v3169_v30 }
 0x20a   : > { %v1550_v11 = vsel %vm1548_vm1, %v1517_v10, %v4613_v1  ;;  %v1605_v27 = vsel %vm1581_vm2, %v1572_v25, %v3309_v15  ;;  %v4620_v25 = vld [vmem:[#allocation28_spill] sm:$0xff] }
 0x20b   : > { %1469 = vrot.lane.b32.xlu2 %v2414_v16, %s2541_s27  ;;  %1453 = vrot.lane.b32.xlu1 %v2406_v46, %s2541_s27  ;;  %v1583_v28 = vsel %vm1581_vm2, %v1550_v11, %v3167_v44  ;;  %v1638_v44 = vsel %vm1614_vm3, %v1605_v27, %v3389_v40  ;;  %v4615_v40 = vld [vmem:[#allocation39_spill] sm:$0xff]  ;;  %v2383_v11 = vld [vmem:[%s2586_s19 + $0x169] sm:$0xff]  ;;  %v1545_v27 = vsel %vm1515_vm0, %v4598_v9, %v4620_v25 }
 0x20c   : > { %1341 = vrot.lane.b32.xlu0 %v2382_v59, %s2540_s26  ;;  %v2366_v59 = vld [vmem:[%s2586_s19 + $0x99] sm:$0xff]  ;;  %v1616_v36 = vsel %vm1614_vm3, %v1583_v28, %v3343_v47  ;;  %v4619_v28 = vld [vmem:[#allocation13_spill] sm:$0xff] }
 0x20d   : > { %v1096_v54 = vpop.permute.xlu2 %1095  ;;  %v1076_v13 = vpop.permute.xlu1 %1075  ;;  %v1649_v30 = vsel %vm1647_vm4, %v1616_v36, %v3543_v41  ;;  %v4616_v41 = vld [vmem:[#allocation22_spill] sm:$0xff] }
 0x20e   : > { %v3714_v43 = vsel %vm1647_vm4, %v1645_v52, %v1096_v54  ;;  %v3717_v16 = vsel %vm1647_vm4, %v1635_v55, %v1076_v13  ;;  %v1074_v46 = vpop.permute.xlu0 %1073  ;;  %v2398_v52 = vld [vmem:[%s2586_s19 + $0x9a] sm:$0xff] }
 0x20f   : > { %v3720_v19 = vsel %vm1647_vm4, %v1634_v32, %v1074_v46  ;;  %v2390_v54 = vld [vmem:[%s2586_s19 + $0x3a] sm:$0xff]  ;;  %v4617_v32 = vld [vmem:[#allocation77_spill] sm:$0xff] }
 0x210   : > { %v4614_v13 = vld [vmem:[#allocation3_spill] sm:$0xff]  ;;  %v1542_v46 = vsel %vm1515_vm0, %v4617_v32, %v4616_v41  ;;  %v4621_v36 = vld [vmem:[#allocation70_spill] sm:$0xff] }
 0x211   : > { %v1520_v24 = vsel %vm1515_vm0, %v4615_v40, %v4614_v13 }
 0x213   : > { %1199 = vrot.lane.b32.xlu2 %v2343_v2, %s2539_s25  ;;  %1309 = vrot.lane.b32.xlu1 %v2366_v59, %s2540_s26  ;;  %v4618_v2 = vld [vmem:[#allocation64_spill] sm:$0xff] }
 0x214   : > { %1293 = vrot.lane.b32.xlu0 %v2358_v62, %s2540_s26  ;;  %v1553_v59 = vsel %vm1548_vm1, %v1520_v24, %v4618_v2  ;;  %v197_v24 = vld [vmem:[%s2586_s19] sm:$0xff] }
 0x215   : > { %v1166_v26 = vpop.permute.xlu2 %1165  ;;  %v1082_v34 = vpop.permute.xlu1 %1081  ;;  %v1586_v58 = vsel %vm1581_vm2, %v1553_v59, %v3179_v0  ;;  %v2367_v59 = vld [vmem:[%s2586_s19 + $0xa9] sm:$0xff] }
 0x216   : > { %v3748_v50 = vsel %vm1680_vm5, %v1649_v30, %v1166_v26  ;;  %v3751_v55 = vsel %vm1647_vm4, %v1638_v44, %v1082_v34  ;;  %v1080_v15 = vpop.permute.xlu0 %1079  ;;  %v1619_v62 = vsel %vm1614_vm3, %v1586_v58, %v3355_v53  ;;  %v4622_v30 = vld [vmem:[#allocation46_spill] sm:$0xff]  ;;  %v1578_v34 = vsel %vm1548_vm1, %v1545_v27, %v3193_v8  ;;  %v2359_v58 = vld [vmem:[%s2586_s19 + $0x49] sm:$0xff]  ;;  %v4634_v27 = vld [vmem:[#allocation31_spill] sm:$0xff] }
 0x217   : > { %v3755_v47 = vsel %vm1647_vm4, %v3441_v23, %v1080_v15  ;;  %v1575_v23 = vsel %vm1548_vm1, %v1542_v46, %v3181_v4  ;;  %v1652_v4 = vsel %vm1647_vm4, %v1619_v62, %v3565_v6  ;;  %v2375_v6 = vld [vmem:[%s2586_s19 + $0x109] sm:$0xff]  ;;  %v1611_v9 = vsel %vm1581_vm2, %v1578_v34, %v3333_v37  ;;  %v4623_v15 = vld [vmem:[#allocation103_spill] sm:$0xff] }
 0x218   : > { %v1608_v10 = vsel %vm1581_vm2, %v1575_v23, %v3321_v33  ;;  %v4626_v23 = vld [vmem:[#allocation8_spill] sm:$0xff] }
 0x219   : > { %v1641_v0 = vsel %vm1614_vm3, %v1608_v10, %v3401_v57  ;;  %v1523_v57 = vsel %vm1515_vm0, %v4561_v42, %v4619_v28  ;;  %v4627_v10 = vld [vmem:[#allocation16_spill] sm:$0xff] }
 0x21a   : > { %v1556_v44 = vsel %vm1548_vm1, %v1523_v57, %v4621_v36  ;;  %v1526_v62 = vsel %vm1515_vm0, %v4566_v45, %v4627_v10  ;;  %v4632_v45 = vld [vmem:[#allocation102_spill] sm:$0xff]  ;;  %v4640_v10 = vld [vmem:[#allocation45_spill] sm:$0xff] }
 0x21b   : > { %1437 = vrot.lane.b32.xlu2 %v2398_v52, %s2541_s27  ;;  %1421 = vrot.lane.b32.xlu1 %v2390_v54, %s2541_s27  ;;  %v1589_v26 = vsel %vm1581_vm2, %v1556_v44, %v3191_v7  ;;  %v4624_v7 = vld [vmem:[#allocation96_spill] sm:$0xff]  ;;  %v4625_v52 = vld [vmem:[#allocation27_spill] sm:$0xff] }
 0x21c   : > { %1215 = vrot.lane.b32.xlu0 %v4608_v48, %s2539_s25  ;;  %v2407_v48 = vld [vmem:[%s2586_s19 + $0x10a] sm:$0xff]  ;;  %v1644_v54 = vsel %vm1614_vm3, %v1611_v9, %v4625_v52 }
 0x21d   : > { %v1172_v22 = vpop.permute.xlu2 %1171  ;;  %v1088_v60 = vpop.permute.xlu1 %1087 }
 0x21e   : > { %v3784_v56 = vsel %vm1680_vm5, %v1652_v4, %v1172_v22  ;;  %v3787_v1 = vsel %vm1647_vm4, %v1641_v0, %v1088_v60  ;;  %v1086_v33 = vpop.permute.xlu0 %1085  ;;  %v4628_v0 = vld [vmem:[#allocation34_spill] sm:$0xff]  ;;  %v4629_v22 = vld [vmem:[#allocation76_spill] sm:$0xff] }
 0x21f   : > { %v3791_v53 = vsel %vm1647_vm4, %v3478_v17, %v1086_v33  ;;  %v1544_v17 = vsel %vm1515_vm0, %v3129_v35, %v4622_v30  ;;  %v1622_v35 = vsel %vm1614_vm3, %v1589_v26, %v4623_v15  ;;  %v1559_v60 = vsel %vm1548_vm1, %v1526_v62, %v4629_v22  ;;  %v4630_v33 = vld [vmem:[#allocation88_spill] sm:$0xff]  ;;  %v4641_v62 = vld [vmem:[#allocation63_spill] sm:$0xff] }
 0x220   : > { %v1577_v42 = vsel %vm1548_vm1, %v1544_v17, %v3195_v3  ;;  %v1655_v13 = vsel %vm1647_vm4, %v1622_v35, %v3587_v20  ;;  %v1516_v20 = vsel %vm1515_vm0, %v197_v24, %v4626_v23  ;;  %v2391_v15 = vld [vmem:[%s2586_s19 + $0x4a] sm:$0xff]  ;;  %v4643_v22 = vld [vmem:[#allocation91_spill] sm:$0xff] }
 0x221   : > { %v1610_v8 = vsel %vm1581_vm2, %v1577_v42, %v4624_v7  ;;  %v1549_v4 = vsel %vm1548_vm1, %v1516_v20, %v4628_v0  ;;  %v2352_v35 = vld [vmem:[%s2586_s19 + $0x170] sm:$0xff]  ;;  %v4638_v23 = vld [vmem:[#allocation4_spill] sm:$0xff]  ;;  %v4642_v0 = vld [vmem:[#allocation90_spill] sm:$0xff] }
 0x222   : > { %v1643_v37 = vsel %vm1614_vm3, %v1610_v8, %v3496_v63  ;;  %v2415_v63 = vld [vmem:[%s2586_s19 + $0x16a] sm:$0xff] }
 0x223   : > { %1455 = vrot.lane.b32.xlu2 %v2407_v48, %s2541_s27  ;;  %1343 = vrot.lane.b32.xlu1 %v2383_v11, %s2540_s26  ;;  %v1592_v48 = vsel %vm1581_vm2, %v1559_v60, %v4630_v33  ;;  %v4631_v11 = vld [vmem:[#allocation89_spill] sm:$0xff]  ;;  %v4644_v33 = vld [vmem:[#allocation104_spill] sm:$0xff] }
 0x224   : > { %1327 = vrot.lane.b32.xlu0 %v2375_v6, %s2540_s26  ;;  %v1582_v28 = vsel %vm1581_vm2, %v1549_v4, %v4631_v11  ;;  %v4633_v6 = vld [vmem:[#allocation105_spill] sm:$0xff]  ;;  %v4645_v11 = vld [vmem:[#allocation99_spill] sm:$0xff] }
 0x225   : > { %v1178_v3 = vpop.permute.xlu2 %1177  ;;  %v1094_v40 = vpop.permute.xlu1 %1093  ;;  %v1615_v57 = vsel %vm1614_vm3, %v1582_v28, %v4632_v45  ;;  %v1625_v25 = vsel %vm1614_vm3, %v1592_v48, %v4633_v6  ;;  %v2344_v7 = vld [vmem:[%s2586_s19 + $0x110] sm:$0xff] }
 0x226   : > { %v3830_v41 = vsel %vm1680_vm5, %v1655_v13, %v1178_v3  ;;  %v3833_v32 = vsel %vm1647_vm4, %v1644_v54, %v1094_v40  ;;  %v1092_v46 = vpop.permute.xlu0 %1091  ;;  %v1648_v36 = vsel %vm1647_vm4, %v1615_v57, %v4634_v27  ;;  %v1658_v44 = vsel %vm1647_vm4, %v1625_v25, %v3609_v29  ;;  %v4635_v13 = vld [vmem:[#allocation10_spill] sm:$0xff]  ;;  %v4639_v20 = vld [vmem:[#allocation37_spill] sm:$0xff] }
 0x227   : > { %v3836_v2 = vsel %vm1647_vm4, %v1643_v37, %v1092_v46  ;;  %v2384_v40 = vld [vmem:[%s2586_s19 + $0x171] sm:$0xff] }
 0x228   : > { %v2376_v24 = vld [vmem:[%s2586_s19 + $0x111] sm:$0xff] }
 0x229   : > { %v4636_v37 = vld [vmem:[#allocation14_spill] sm:$0xff]  ;;  %v4646_v45 = vld [vmem:[#allocation25_spill] sm:$0xff] }
 0x22a   : > { %v4637_v46 = vld [vmem:[#allocation38_spill] sm:$0xff] }
 0x22b   : > { %1311 = vrot.lane.b32.xlu2 %v2367_v59, %s2540_s26  ;;  %1295 = vrot.lane.b32.xlu1 %v2359_v58, %s2540_s26  ;;  %v1522_v59 = vsel %vm1515_vm0, %v4637_v46, %v4636_v37  ;;  %v2399_v58 = vld [vmem:[%s2586_s19 + $0xaa] sm:$0xff] }
 0x22c   : > { %1471 = vrot.lane.b32.xlu0 %v2415_v63, %s2541_s27  ;;  %v2368_v37 = vld [vmem:[%s2586_s19 + $0xb1] sm:$0xff] }
 0x22d   : > { %v1184_v30 = vpop.permute.xlu2 %1183  ;;  %v1164_v17 = vpop.permute.xlu1 %1163  ;;  %v1846_v46 = vld [vmem:[%s4389_s1 + $0x10] sm:$0xff] }
 0x22e   : > { %v3866_v26 = vsel %vm1680_vm5, %v1658_v44, %v1184_v30  ;;  %v3869_v34 = vsel %vm1680_vm5, %v1648_v36, %v1164_v17  ;;  %v1098_v42 = vpop.permute.xlu0 %1097  ;;  %v2360_v17 = vld [vmem:[%s2586_s19 + $0x51] sm:$0xff] }
 0x22f   : > { %v3873_v9 = vsel %vm1647_vm4, %v3519_v49, %v1098_v42  ;;  %v2416_v42 = vld [vmem:[%s2586_s19 + $0x172] sm:$0xff] }
 0x233   : > { %1423 = vrot.lane.b32.xlu2 %v2391_v15, %s2541_s27  ;;  %1217 = vrot.lane.b32.xlu1 %v2352_v35, %s2539_s25  ;;  %v2408_v15 = vld [vmem:[%s2586_s19 + $0x112] sm:$0xff] }
 0x234   : > { %1201 = vrot.lane.b32.xlu0 %v2344_v7, %s2539_s25 }
 0x235   : > { %v1190_v29 = vpop.permute.xlu2 %1189  ;;  %v1170_v8 = vpop.permute.xlu1 %1169 }
 0x236   : > { %v3883_v52 = vsel %vm1680_vm5, %v3643_v18, %v1190_v29  ;;  %v3887_v49 = vsel %vm1680_vm5, %v3475_v14, %v1170_v8  ;;  %v1168_v54 = vpop.permute.xlu0 %1167  ;;  %v1521_v18 = vsel %vm1515_vm0, %v4639_v20, %v4638_v23  ;;  %v1555_v14 = vsel %vm1548_vm1, %v1522_v59, %v4640_v10  ;;  %v1848_v29 = vld [vmem:[%s4389_s1 + $0x20] sm:$0xf]  ;;  %v4649_v20 = vld [vmem:[#allocation56_spill] sm:$0xff] }
 0x237   : > { %v3891_v3 = vsel %vm1680_vm5, %v4635_v13, %v1168_v54  ;;  %v1554_v63 = vsel %vm1548_vm1, %v1521_v18, %v4641_v62  ;;  %v1588_v4 = vsel %vm1581_vm2, %v1555_v14, %v4642_v0  ;;  %2458 = vmatpush.msk.msra.mxu2 %vm1949_vm6, %v1848_v29  ;;  %2459 = vmatpush.msk.msra.mxu3 %vm1949_vm6, %v1848_v29  ;;  %v2345_v8 = vld [vmem:[%s2586_s19 + $0x120] sm:$0xff]  ;;  %v1847_v54 = vld [vmem:[%s4389_s1 + $0x18] sm:$0xff]  ;;  %v2506_v13 = vld [vmem:[%s2586_s19 + $0x90] sm:$0xff] }
 0x238   : > { %v1587_v60 = vsel %vm1581_vm2, %v1554_v63, %v4643_v22  ;;  %v1621_v48 = vsel %vm1614_vm3, %v1588_v4, %v4644_v33  ;;  %2421 = vmatpush.msk.msra.mxu0 %vm1949_vm6, %v1848_v29  ;;  %2457 = vmatpush.msk.msra.mxu1 %vm1949_vm6, %v1848_v29  ;;  %v2507_v59 = vld [vmem:[%s2586_s19 + $0x80] sm:$0xff]  ;;  %v4651_v62 = vld [vmem:[#allocation94_spill] sm:$0xff] }
 0x239   : > { %v1620_v28 = vsel %vm1614_vm3, %v1587_v60, %v4645_v11  ;;  %v1654_v57 = vsel %vm1647_vm4, %v1621_v48, %v4646_v45  ;;  %2461 = vmatpush.msra.mxu2 %v1847_v54  ;;  %2462 = vmatpush.msra.mxu3 %v1847_v54  ;;  %v4650_v10 = vld [vmem:[#allocation75_spill] sm:$0xff]  ;;  %v1845_v48 = vld [vmem:[%s4389_s1 + $0x8] sm:$0xff]  ;;  %v4655_v11 = vld [vmem:[#allocation101_spill] sm:$0xff] }
 0x23a   : > { %v1653_v27 = vsel %vm1647_vm4, %v1620_v28, %v3560_v61  ;;  %1965 = vmatpush.msra.mxu0 %v1847_v54  ;;  %2460 = vmatpush.msra.mxu1 %v1847_v54  ;;  %v4652_v0 = vld [vmem:[#allocation87_spill] sm:$0xff]  ;;  %v4656_v45 = vld [vmem:[#allocation73_spill] sm:$0xff] }
 0x23b   : > { %1345 = vrot.lane.b32.xlu2 %v2384_v40, %s2540_s26  ;;  %1329 = vrot.lane.b32.xlu1 %v2376_v24, %s2540_s26  ;;  %v4647_v40 = vld [vmem:[#allocation20_spill] sm:$0xff]  ;;  %v4653_v4 = vld [vmem:[#allocation95_spill] sm:$0xff]  ;;  %v2400_v54 = vld [vmem:[%s2586_s19 + $0xb2] sm:$0xff] }
 0x23c   : > { %1439 = vrot.lane.b32.xlu0 %v2399_v58, %s2541_s27  ;;  %v1528_v24 = vsel %vm1515_vm0, %v2506_v13, %v4647_v40  ;;  %v4648_v58 = vld [vmem:[#allocation6_spill] sm:$0xff]  ;;  %v4654_v60 = vld [vmem:[#allocation107_spill] sm:$0xff]  ;;  %2464 = vmatpush.msra.mxu2 %v1846_v46 }
 0x23d   : > { %v3919_v6 = vpop.permute.xlu2 %1195  ;;  %v1176_v25 = vpop.permute.xlu1 %1175  ;;  %v1527_v23 = vsel %vm1515_vm0, %v2507_v59, %v4648_v58  ;;  %v1561_v18 = vsel %vm1548_vm1, %v1528_v24, %v4649_v20  ;;  %2465 = vmatpush.msra.mxu3 %v1846_v46  ;;  %1966 = vmatpush.msra.mxu0 %v1846_v46  ;;  %v4657_v24 = vld [vmem:[#allocation33_spill] sm:$0xff]  ;;  %v2409_v58 = vld [vmem:[%s2586_s19 + $0x122] sm:$0xff]  ;;  %v4659_v20 = vld [vmem:[#allocation98_spill] sm:$0xff] }
 0x23e   : > { %v3924_v36 = vsel %vm1680_vm5, %v1654_v57, %v1176_v25  ;;  %v1174_v44 = vpop.permute.xlu0 %1173  ;;  %v1560_v14 = vsel %vm1548_vm1, %v1527_v23, %v4650_v10  ;;  %v1594_v63 = vsel %vm1581_vm2, %v1561_v18, %v4651_v62  ;;  %2467 = vmatpush.msra.mxu2 %v1845_v48  ;;  %2463 = vmatpush.msra.mxu1 %v1846_v46  ;;  %v4658_v23 = vld [vmem:[#allocation26_spill] sm:$0xff]  ;;  %v2346_v62 = vld [vmem:[%s2586_s19 + $0x128] sm:$0xff] }
 0x23f   : > { %v3927_v30 = vsel %vm1680_vm5, %v1653_v27, %v1174_v44  ;;  %v1593_v22 = vsel %vm1581_vm2, %v1560_v14, %v4653_v4  ;;  %v1627_v33 = vsel %vm1614_vm3, %v1594_v63, %v4654_v60  ;;  %2468 = vmatpush.msra.mxu3 %v1845_v48  ;;  %1967 = vmatpush.msra.mxu0 %v1845_v48  ;;  %v2369_v63 = vld [vmem:[%s2586_s19 + $0xc1] sm:$0xff] }
 0x240   : > { %v1626_v28 = vsel %vm1614_vm3, %v1593_v22, %v4655_v11  ;;  %v1660_v57 = vsel %vm1647_vm4, %v1627_v33, %v4656_v45  ;;  %2466 = vmatpush.msra.mxu1 %v1845_v48  ;;  %v1697_v4 = vsel %vm1680_vm5, %v3677_v51, %v3919_v6  ;;  %v2401_v45 = vld [vmem:[%s2586_s19 + $0xc2] sm:$0xff] }
 0x241   : > { %v1659_v44 = vsel %vm1647_vm4, %v1626_v28, %v3604_v5  ;;  %v2392_v5 = vld [vmem:[%s2586_s19 + $0x52] sm:$0xff]  ;;  %v2393_v51 = vld [vmem:[%s2586_s19 + $0x62] sm:$0xff] }
 0x242   : > { %v2354_v6 = vld [vmem:[%s2586_s19 + $0x188] sm:$0xff] }
 0x243   : > { %1297 = vrot.lane.b32.xlu2 %v2360_v17, %s2540_s26  ;;  %1473 = vrot.lane.b32.xlu1 %v2416_v42, %s2541_s27 }
 0x244   : > { %1457 = vrot.lane.b32.xlu0 %v2408_v15, %s2541_s27  ;;  %v1844_v15 = vld [vmem:[%s4389_s1] sm:$0xff] }
 0x245   : > { %v3935_v61 = vpop.permute.xlu2 %1339  ;;  %v3937_v35 = vpop.permute.xlu1 %1181  ;;  %2470 = vmatpush.msra.mxu2 %v1844_v15  ;;  %2471 = vmatpush.msra.mxu3 %v1844_v15 }
 0x246   : > { %v3939_v7 = vpop.permute.xlu0 %1179  ;;  %1968 = vmatpush.msra.mxu0 %v1844_v15  ;;  %2469 = vmatpush.msra.mxu1 %v1844_v15  ;;  %v4660_v15 = vld [vmem:[#allocation5_spill] sm:$0xff] }
 0x24b   : > { %1219 = vrot.lane.b32.xlu2 %v4652_v0, %s2539_s25  ;;  %1203 = vrot.lane.b32.xlu1 %v2345_v8, %s2539_s25  ;;  %v2377_v8 = vld [vmem:[%s2586_s19 + $0x121] sm:$0xff] }
 0x24c   : > { %1313 = vrot.lane.b32.xlu0 %v2368_v37, %s2540_s26  ;;  %v2361_v0 = vld [vmem:[%s2586_s19 + $0x61] sm:$0xff] }
 0x24d   : > { %v3979_v25 = vpop.permute.xlu2 %1291  ;;  %v1188_v27 = vpop.permute.xlu1 %1187 }
 0x24e   : > { %v3984_v17 = vsel %vm1680_vm5, %v1660_v57, %v1188_v27  ;;  %v1186_v42 = vpop.permute.xlu0 %1185 }
 0x24f   : > { %v3990_v29 = vsel %vm1680_vm5, %v1659_v44, %v1186_v42  ;;  %v2508_v42 = vld [vmem:[%s2586_s19 + $0x60] sm:$0xff] }
 0x253   : > { %1331 = vrot.lane.b32.xlu2 %v2377_v8, %s2540_s26  ;;  %1441 = vrot.lane.b32.xlu1 %v2400_v54, %s2541_s27  ;;  %v1524_v8 = vsel %vm1515_vm0, %v2508_v42, %v4660_v15 }
 0x254   : > { %1425 = vrot.lane.b32.xlu0 %v2392_v5, %s2541_s27  ;;  %v4661_v5 = vld [vmem:[#allocation69_spill] sm:$0xff] }
 0x255   : > { %v3998_v13 = vpop.permute.xlu2 %1213  ;;  %v1194_v40 = vpop.permute.xlu1 %1193 }
 0x256   : > { %v4002_v37 = vsel %vm1680_vm5, %v4657_v24, %v1194_v40  ;;  %v1192_v46 = vpop.permute.xlu0 %1191  ;;  %v1557_v40 = vsel %vm1548_vm1, %v1524_v8, %v4661_v5  ;;  %v2410_v24 = vld [vmem:[%s2586_s19 + $0x12a] sm:$0xff] }
 0x257   : > { %v4006_v59 = vsel %vm1680_vm5, %v3640_v31, %v1192_v46  ;;  %v4662_v46 = vld [vmem:[#allocation93_spill] sm:$0xff]  ;;  %v2509_v8 = vld [vmem:[%s2586_s19 + $0x68] sm:$0xff] }
 0x25b   : > { %1475 = vrot.lane.b32.xlu2 %v4658_v23, %s2541_s27  ;;  %1459 = vrot.lane.b32.xlu1 %v2409_v58, %s2541_s27  ;;  %v1590_v58 = vsel %vm1581_vm2, %v1557_v40, %v4662_v46  ;;  %v2378_v23 = vld [vmem:[%s2586_s19 + $0x129] sm:$0xff]  ;;  %v4668_v40 = vld [vmem:[#allocation50_spill] sm:$0xff] }
 0x25c   : > { %1347 = vrot.lane.b32.xlu0 %v4659_v20, %s2540_s26  ;;  %v4663_v20 = vld [vmem:[#allocation100_spill] sm:$0xff]  ;;  %v2347_v46 = vld [vmem:[%s2586_s19 + $0x138] sm:$0xff] }
 0x25d   : > { %v4014_v18 = vpop.permute.xlu2 %1325  ;;  %v1324_v10 = vpop.permute.xlu1 %1323 }
 0x25e   : > { %v1212_v14 = vpop.permute.xlu0 %1211  ;;  %v1730_v33 = vsel %vm1713_vm8, %v1697_v4, %v1324_v10  ;;  %v1623_v10 = vsel %vm1614_vm3, %v1590_v58, %v4663_v20  ;;  %v4669_v58 = vld [vmem:[#allocation92_spill] sm:$0xff]  ;;  %v4670_v20 = vld [vmem:[#allocation106_spill] sm:$0xff] }
 0x25f   : > { %v1705_v31 = vsel %vm1680_vm5, %v3637_v12, %v1212_v14  ;;  %v4664_v14 = vld [vmem:[#allocation40_spill] sm:$0xff] }
 0x260   : > { %v1738_v12 = vsel %vm1713_vm8, %v1705_v31, %v3935_v61 }
 0x263   : > { %1205 = vrot.lane.b32.xlu2 %v2346_v62, %s2539_s25  ;;  %1315 = vrot.lane.b32.xlu1 %v2369_v63, %s2540_s26  ;;  %v1656_v62 = vsel %vm1647_vm4, %v1623_v10, %v4664_v14  ;;  %v4665_v63 = vld [vmem:[#allocation97_spill] sm:$0xff] }
 0x264   : > { %1299 = vrot.lane.b32.xlu0 %v2361_v0, %s2540_s26  ;;  %v1689_v0 = vsel %vm1680_vm5, %v1656_v62, %v3939_v7  ;;  %v2370_v7 = vld [vmem:[%s2586_s19 + $0xc9] sm:$0xff] }
 0x265   : > { %v4027_v22 = vpop.permute.xlu2 %1469  ;;  %v1468_v60 = vpop.permute.xlu1 %1467 }
 0x266   : > { %v1771_v48 = vsel %vm1746_vm7, %v1738_v12, %v1468_v60  ;;  %v1452_v11 = vpop.permute.xlu0 %1451  ;;  %v1714_v12 = vsel %vm1713_vm8, %v3869_v34, %v3979_v25  ;;  %v4666_v34 = vld [vmem:[#allocation21_spill] sm:$0xff] }
 0x267   : > { %1804 = vst.msk [vmem:[#allocation2 + $0xc0] sm:$0xff] %vm1779_vm9, %v1771_v48  ;;  %v1763_v28 = vsel %vm1746_vm7, %v1730_v33, %v1452_v11 }
 0x268   : > { %1796 = vst.msk [vmem:[#allocation2 + $0x80] sm:$0xff] %vm1779_vm9, %v1763_v28  ;;  %v2362_v28 = vld [vmem:[%s2586_s19 + $0x69] sm:$0xff] }
 0x26b   : > { %1443 = vrot.lane.b32.xlu2 %v2401_v45, %s2541_s27  ;;  %1427 = vrot.lane.b32.xlu1 %v2393_v51, %s2541_s27 }
 0x26c   : > { %1221 = vrot.lane.b32.xlu0 %v2354_v6, %s2539_s25 }
 0x26d   : > { %v4042_v61 = vpop.permute.xlu2 %1199  ;;  %v1198_v57 = vpop.permute.xlu1 %1197 }
 0x26e   : > { %v1308_v27 = vpop.permute.xlu0 %1307  ;;  %v1836_v44 = vld [vmem:[#allocation2 + $0xc0] sm:$0xff]  ;;  %v1698_v45 = vsel %vm1680_vm5, %v3674_v38, %v1198_v57 }
 0x26f   : > { %v1828_v54 = vld [vmem:[#allocation2 + $0x80] sm:$0xff]  ;;  %2446 = vmatmul.msk.f32.vlgmr.msra.gmra.mxu3 %vm1779_vm9, %v1836_v44  ;;  %v1722_v31 = vsel %vm1713_vm8, %v1689_v0, %v1308_v27  ;;  %v1731_v6 = vsel %vm1713_vm8, %v1698_v45, %v4014_v18  ;;  %v1706_v27 = vsel %vm1680_vm5, %v3791_v53, %v3998_v13  ;;  %v2394_v53 = vld [vmem:[%s2586_s19 + $0x6a] sm:$0xff]  ;;  %v2355_v13 = vld [vmem:[%s2586_s19 + $0x198] sm:$0xff] }
 0x270   : > { %2438 = vmatmul.msk.f32.vlgmr.msra.gmra.mxu2 %vm1779_vm9, %v1828_v54  ;;  %v4667_v54 = vld [vmem:[#allocation17_spill] sm:$0xff] }
 0x271   : > { %v1525_v18 = vsel %vm1515_vm0, %v2509_v8, %v4667_v54 }
 0x273   : > { %1461 = vrot.lane.b32.xlu2 %v2410_v24, %s2541_s27  ;;  %1349 = vrot.lane.b32.xlu1 %v4665_v63, %s2540_s26  ;;  %v1558_v24 = vsel %vm1548_vm1, %v1525_v18, %v4668_v40  ;;  %v2371_v40 = vld [vmem:[%s2586_s19 + $0xd9] sm:$0xff] }
 0x274   : > { %1333 = vrot.lane.b32.xlu0 %v2378_v23, %s2540_s26  ;;  %v1591_v23 = vsel %vm1581_vm2, %v1558_v24, %v4669_v58 }
 0x275   : > { %v1438_v4 = vpop.permute.xlu2 %1437  ;;  %v1436_v60 = vpop.permute.xlu1 %1435  ;;  %v1624_v10 = vsel %vm1614_vm3, %v1591_v23, %v4670_v20 }
 0x276   : > { %v1755_v33 = vsel %vm1746_vm7, %v1722_v31, %v1436_v60  ;;  %v1420_v48 = vpop.permute.xlu0 %1419 }
 0x277   : > { %1788 = vst.msk [vmem:[#allocation2 + $0x40] sm:$0xff] %vm1779_vm9, %v1755_v33  ;;  %v1747_v11 = vsel %vm1746_vm7, %v1714_v12, %v1420_v48 }
 0x278   : > { %1780 = vst.msk [vmem:[#allocation2] sm:$0xff] %vm1779_vm9, %v1747_v11  ;;  %v2387_v11 = vld [vmem:[%s2586_s19 + $0x199] sm:$0xff] }
 0x27b   : > { %1317 = vrot.lane.b32.xlu2 %v2370_v7, %s2540_s26  ;;  %1301 = vrot.lane.b32.xlu1 %v2362_v28, %s2540_s26  ;;  %v2379_v7 = vld [vmem:[%s2586_s19 + $0x139] sm:$0xff] }
 0x27c   : > { %1477 = vrot.lane.b32.xlu0 %v4666_v34, %s2541_s27 }
 0x27d   : > { %v4081_v25 = vpop.permute.xlu2 %1455  ;;  %v1454_v51 = vpop.permute.xlu1 %1453 }
 0x27e   : > { %v1764_v38 = vsel %vm1746_vm7, %v1731_v6, %v1454_v51  ;;  %v1342_v57 = vpop.permute.xlu0 %1341  ;;  %v1820_v44 = vld [vmem:[#allocation2 + $0x40] sm:$0xff] }
 0x27f   : > { %1797 = vst.msk [vmem:[#allocation2 + $0x88] sm:$0xff] %vm1779_vm9, %v1764_v38  ;;  %v1739_v42 = vsel %vm1713_vm8, %v1706_v27, %v1342_v57  ;;  %v1812_v15 = vld [vmem:[#allocation2] sm:$0xff]  ;;  %2430 = vmatmul.msk.f32.vlgmr.msra.gmra.mxu1 %vm1779_vm9, %v1820_v44 }
 0x280   : > { %v1772_v5 = vsel %vm1746_vm7, %v1739_v42, %v4027_v22  ;;  %2422 = vmatmul.msk.f32.vlgmr.msra.gmra.mxu0 %vm1779_vm9, %v1812_v15  ;;  %v4671_v22 = vld [vmem:[#allocation35_spill] sm:$0xff]  ;;  %v4672_v42 = vld [vmem:[#allocation41_spill] sm:$0xff] }
 0x281   : > { %1805 = vst.msk [vmem:[#allocation2 + $0xc8] sm:$0xff] %vm1779_vm9, %v1772_v5  ;;  %v1657_v14 = vsel %vm1647_vm4, %v1624_v10, %v4671_v22  ;;  %v2363_v27 = vld [vmem:[%s2586_s19 + $0x79] sm:$0xff]  ;;  %v1699_v15 = vsel %vm1680_vm5, %v4672_v42, %v4042_v61 }
 0x282   : > { %v1690_v62 = vsel %vm1680_vm5, %v1657_v14, %v3937_v35  ;;  %v2402_v35 = vld [vmem:[%s2586_s19 + $0xca] sm:$0xff]  ;;  %v2419_v38 = vld [vmem:[%s2586_s19 + $0x19a] sm:$0xff] }
 0x283   : > { %1429 = vrot.lane.b32.xlu2 %v2394_v53, %s2541_s27  ;;  %1223 = vrot.lane.b32.xlu1 %v2355_v13, %s2539_s25  ;;  %v2411_v57 = vld [vmem:[%s2586_s19 + $0x13a] sm:$0xff] }
 0x284   : > { %1207 = vrot.lane.b32.xlu0 %v2347_v46, %s2539_s25  ;;  %v2356_v53 = vld [vmem:[%s2586_s19 + $0x1a0] sm:$0xff] }
 0x285   : > { %v4115_v63 = vpop.permute.xlu2 %1311  ;;  %v1310_v0 = vpop.permute.xlu1 %1309  ;;  %v2348_v13 = vld [vmem:[%s2586_s19 + $0x140] sm:$0xff] }
 0x286   : > { %v1723_v31 = vsel %vm1713_vm8, %v1690_v62, %v1310_v0  ;;  %v1294_v60 = vpop.permute.xlu0 %1293  ;;  %v1829_v12 = vld [vmem:[#allocation2 + $0x88] sm:$0xff]  ;;  %v2403_v14 = vld [vmem:[%s2586_s19 + $0xda] sm:$0xff] }
 0x287   : > { %v1756_v33 = vsel %vm1746_vm7, %v1723_v31, %v1438_v4  ;;  %2439 = vmatmul.msk.f32.gmra.mxu2 %vm1779_vm9, %v1829_v12  ;;  %v1715_v4 = vsel %vm1713_vm8, %v3748_v50, %v1294_v60  ;;  %v2395_v62 = vld [vmem:[%s2586_s19 + $0x7a] sm:$0xff] }
 0x288   : > { %1789 = vst.msk [vmem:[#allocation2 + $0x48] sm:$0xff] %vm1779_vm9, %v1756_v33  ;;  %v1837_v48 = vld [vmem:[#allocation2 + $0xc8] sm:$0xff] }
 0x289   : > { %2447 = vmatmul.msk.f32.gmra.mxu3 %vm1779_vm9, %v1837_v48  ;;  %v2412_v33 = vld [vmem:[%s2586_s19 + $0x142] sm:$0xff] }
 0x28a   : > { %v2420_v48 = vld [vmem:[%s2586_s19 + $0x1a2] sm:$0xff] }
 0x28b   : > { %1351 = vrot.lane.b32.xlu2 %v2387_v11, %s2540_s26  ;;  %1335 = vrot.lane.b32.xlu1 %v2379_v7, %s2540_s26  ;;  %v2388_v11 = vld [vmem:[%s2586_s19 + $0x1a1] sm:$0xff] }
 0x28c   : > { %1445 = vrot.lane.b32.xlu0 %v2402_v35, %s2541_s27  ;;  %v1724_v35 = vsel %vm1713_vm8, %v3866_v26, %v4115_v63 }
 0x28d   : > { %v1424_v28 = vpop.permute.xlu2 %1423  ;;  %v1422_v45 = vpop.permute.xlu1 %1421 }
 0x28e   : > { %v1748_v34 = vsel %vm1746_vm7, %v1715_v4, %v1422_v45  ;;  %v1216_v51 = vpop.permute.xlu0 %1215  ;;  %v2372_v45 = vld [vmem:[%s2586_s19 + $0xe1] sm:$0xff] }
 0x28f   : > { %1781 = vst.msk [vmem:[#allocation2 + $0x8] sm:$0xff] %vm1779_vm9, %v1748_v34  ;;  %v1821_v6 = vld [vmem:[#allocation2 + $0x48] sm:$0xff]  ;;  %v1707_v61 = vsel %vm1680_vm5, %v3787_v1, %v1216_v51 }
 0x290   : > { %2431 = vmatmul.msk.f32.gmra.mxu1 %vm1779_vm9, %v1821_v6  ;;  %v2380_v1 = vld [vmem:[%s2586_s19 + $0x141] sm:$0xff] }
 0x291   : > { %v2396_v34 = vld [vmem:[%s2586_s19 + $0x82] sm:$0xff] }
 0x292   : > { %v2364_v6 = vld [vmem:[%s2586_s19 + $0x81] sm:$0xff] }
 0x293   : > { %1303 = vrot.lane.b32.xlu2 %v2363_v27, %s2540_s26  ;;  %1479 = vrot.lane.b32.xlu1 %v2419_v38, %s2541_s27 }
 0x294   : > { %1463 = vrot.lane.b32.xlu0 %v2411_v57, %s2541_s27 }
 0x295   : > { %v1346_v50 = vpop.permute.xlu2 %1345  ;;  %v1344_v44 = vpop.permute.xlu1 %1343 }
 0x296   : > { %v1328_v8 = vpop.permute.xlu0 %1327  ;;  %v1813_v54 = vld [vmem:[#allocation2 + $0x8] sm:$0xff]  ;;  %v1740_v46 = vsel %vm1713_vm8, %v1707_v61, %v1344_v44 }
 0x297   : > { %v1732_v18 = vsel %vm1713_vm8, %v1699_v15, %v1328_v8  ;;  %2423 = vmatmul.msk.f32.gmra.mxu0 %vm1779_vm9, %v1813_v54  ;;  %v2404_v8 = vld [vmem:[%s2586_s19 + $0xe2] sm:$0xff] }
 0x298   : > { %v1765_v5 = vsel %vm1746_vm7, %v1732_v18, %v4081_v25 }
 0x299   : > { %1798 = vst.msk [vmem:[#allocation2 + $0x90] sm:$0xff] %vm1779_vm9, %v1765_v5 }
 0x29b   : > { %1225 = vrot.lane.b32.xlu2 %v2356_v53, %s2539_s25  ;;  %1209 = vrot.lane.b32.xlu1 %v2348_v13, %s2539_s25 }
 0x29c   : > { %1319 = vrot.lane.b32.xlu0 %v2371_v40, %s2540_s26 }
 0x29d   : > { %v4155_v24 = vpop.permute.xlu2 %1297  ;;  %v1296_v25 = vpop.permute.xlu1 %1295 }
 0x29e   : > { %v1716_v58 = vsel %vm1713_vm8, %v3891_v3, %v1296_v25  ;;  %v1472_v23 = vpop.permute.xlu0 %1471  ;;  %v1717_v61 = vsel %vm1713_vm8, %v3887_v49, %v4155_v24 }
 0x29f   : > { %v1749_v20 = vsel %vm1746_vm7, %v1716_v58, %v1424_v28  ;;  %v1773_v10 = vsel %vm1746_vm7, %v1740_v46, %v1472_v23 }
 0x2a0   : > { %1782 = vst.msk [vmem:[#allocation2 + $0x10] sm:$0xff] %vm1779_vm9, %v1749_v20  ;;  %v1830_v22 = vld [vmem:[#allocation2 + $0x90] sm:$0xff] }
 0x2a1   : > { %1806 = vst.msk [vmem:[#allocation2 + $0xd0] sm:$0xff] %vm1779_vm9, %v1773_v10  ;;  %2440 = vmatmul.msk.f32.gmra.mxu2 %vm1779_vm9, %v1830_v22 }
 0x2a3   : > { %1447 = vrot.lane.b32.xlu1 %v2403_v14, %s2541_s27  ;;  %1337 = vrot.lane.b32.xlu2 %v2380_v1, %s2540_s26 }
 0x2a4   : > { %1431 = vrot.lane.b32.xlu0 %v2395_v62, %s2541_s27 }
 0x2a5   : > { %v1218_v3 = vpop.permute.xlu1 %1217  ;;  %v1220_v31 = vpop.permute.xlu2 %1219 }
 0x2a6   : > { %v1202_v0 = vpop.permute.xlu0 %1201  ;;  %v1708_v27 = vsel %vm1680_vm5, %v3671_v39, %v1218_v3  ;;  %v1709_v10 = vsel %vm1680_vm5, %v3836_v2, %v1220_v31 }
 0x2a7   : > { %v1814_v60 = vld [vmem:[#allocation2 + $0x10] sm:$0xff]  ;;  %v1700_v26 = vsel %vm1680_vm5, %v3720_v19, %v1202_v0  ;;  %v1741_v38 = vsel %vm1713_vm8, %v1708_v27, %v1346_v50 }
 0x2a8   : > { %v1838_v12 = vld [vmem:[#allocation2 + $0xd0] sm:$0xff]  ;;  %2424 = vmatmul.msk.f32.gmra.mxu0 %vm1779_vm9, %v1814_v60 }
 0x2a9   : > { %2448 = vmatmul.msk.f32.gmra.mxu3 %vm1779_vm9, %v1838_v12 }
 0x2ab   : > { %1465 = vrot.lane.b32.xlu1 %v2412_v33, %s2541_s27  ;;  %1481 = vrot.lane.b32.xlu2 %v2420_v48, %s2541_s27 }
 0x2ac   : > { %1353 = vrot.lane.b32.xlu0 %v2388_v11, %s2540_s26 }
 0x2ad   : > { %v1330_v7 = vpop.permute.xlu1 %1329  ;;  %v1332_v51 = vpop.permute.xlu2 %1331 }
 0x2ae   : > { %v1440_v4 = vpop.permute.xlu0 %1439  ;;  %v1733_v57 = vsel %vm1713_vm8, %v1700_v26, %v1330_v7 }
 0x2af   : > { %v1757_v28 = vsel %vm1746_vm7, %v1724_v35, %v1440_v4 }
 0x2b0   : > { %1790 = vst.msk [vmem:[#allocation2 + $0x50] sm:$0xff] %vm1779_vm9, %v1757_v28 }
 0x2b3   : > { %1321 = vrot.lane.b32.xlu1 %v2372_v45, %s2540_s26  ;;  %1433 = vrot.lane.b32.xlu2 %v2396_v34, %s2541_s27 }
 0x2b4   : > { %1305 = vrot.lane.b32.xlu0 %v2364_v6, %s2540_s26 }
 0x2b5   : > { %v1474_v63 = vpop.permute.xlu1 %1473  ;;  %v1476_v54 = vpop.permute.xlu2 %1475 }
 0x2b6   : > { %v1774_v44 = vsel %vm1746_vm7, %v1741_v38, %v1474_v63  ;;  %v1458_v42 = vpop.permute.xlu0 %1457 }
 0x2b7   : > { %1807 = vst.msk [vmem:[#allocation2 + $0xd8] sm:$0xff] %vm1779_vm9, %v1774_v44  ;;  %v1766_v39 = vsel %vm1746_vm7, %v1733_v57, %v1458_v42  ;;  %v1822_v15 = vld [vmem:[#allocation2 + $0x50] sm:$0xff] }
 0x2b8   : > { %1799 = vst.msk [vmem:[#allocation2 + $0x98] sm:$0xff] %vm1779_vm9, %v1766_v39  ;;  %2432 = vmatmul.msk.f32.gmra.mxu1 %vm1779_vm9, %v1822_v15  ;;  %v4253_v39 = vld [vmem:[%s4390_s2] ss:$0 sm:$0xff] }
 0x2bc   : > { %1449 = vrot.lane.b32.xlu0 %v2404_v8, %s2541_s27 }
 0x2bd   : > { %v1204_v19 = vpop.permute.xlu1 %1203  ;;  %v1206_v53 = vpop.permute.xlu2 %1205 }
 0x2be   : > { %v1314_v50 = vpop.permute.xlu0 %1313  ;;  %v1839_v18 = vld [vmem:[#allocation2 + $0xd8] sm:$0xff]  ;;  %v1701_v23 = vsel %vm1680_vm5, %v3717_v16, %v1204_v19  ;;  %v1702_v45 = vsel %vm1680_vm5, %v3607_v21, %v1206_v53 }
 0x2bf   : > { %v1831_v5 = vld [vmem:[#allocation2 + $0x98] sm:$0xff]  ;;  %2449 = vmatmul.msk.f32.gmra.mxu3 %vm1779_vm9, %v1839_v18  ;;  %v1725_v13 = vsel %vm1713_vm8, %v3990_v29, %v1314_v50  ;;  %v1734_v29 = vsel %vm1713_vm8, %v1701_v23, %v1332_v51 }
 0x2c0   : > { %2441 = vmatmul.msk.f32.gmra.mxu2 %vm1779_vm9, %v1831_v5 }
 0x2c5   : > { %v1442_v40 = vpop.permute.xlu1 %1441  ;;  %v1444_v14 = vpop.permute.xlu2 %1443 }
 0x2c6   : > { %v1758_v25 = vsel %vm1746_vm7, %v1725_v13, %v1442_v40  ;;  %v1426_v46 = vpop.permute.xlu0 %1425 }
 0x2c7   : > { %1791 = vst.msk [vmem:[#allocation2 + $0x58] sm:$0xff] %vm1779_vm9, %v1758_v25  ;;  %v1750_v58 = vsel %vm1746_vm7, %v1717_v61, %v1426_v46 }
 0x2c8   : > { %1783 = vst.msk [vmem:[#allocation2 + $0x18] sm:$0xff] %vm1779_vm9, %v1750_v58 }
 0x2cd   : > { %v1460_v20 = vpop.permute.xlu1 %1459  ;;  %v1462_v33 = vpop.permute.xlu2 %1461 }
 0x2ce   : > { %v1767_v49 = vsel %vm1746_vm7, %v1734_v29, %v1460_v20  ;;  %v1348_v24 = vpop.permute.xlu0 %1347  ;;  %v1823_v22 = vld [vmem:[#allocation2 + $0x58] sm:$0xff] }
 0x2cf   : > { %1800 = vst.msk [vmem:[#allocation2 + $0xa0] sm:$0xff] %vm1779_vm9, %v1767_v49  ;;  %v1742_v1 = vsel %vm1713_vm8, %v1709_v10, %v1348_v24  ;;  %v1815_v62 = vld [vmem:[#allocation2 + $0x18] sm:$0xff]  ;;  %2433 = vmatmul.msk.f32.gmra.mxu1 %vm1779_vm9, %v1823_v22 }
 0x2d0   : > { %v1775_v16 = vsel %vm1746_vm7, %v1742_v1, %v1476_v54  ;;  %2425 = vmatmul.msk.f32.gmra.mxu0 %vm1779_vm9, %v1815_v62 }
 0x2d1   : > { %1808 = vst.msk [vmem:[#allocation2 + $0xe0] sm:$0xff] %vm1779_vm9, %v1775_v16 }
 0x2d5   : > { %v1316_v3 = vpop.permute.xlu1 %1315  ;;  %v1318_v4 = vpop.permute.xlu2 %1317 }
 0x2d6   : > { %v1726_v2 = vsel %vm1713_vm8, %v3984_v17, %v1316_v3  ;;  %v1300_v0 = vpop.permute.xlu0 %1299  ;;  %v1832_v31 = vld [vmem:[#allocation2 + $0xa0] sm:$0xff]  ;;  %v1727_v23 = vsel %vm1713_vm8, %v3883_v52, %v1318_v4 }
 0x2d7   : > { %v1759_v60 = vsel %vm1746_vm7, %v1726_v2, %v1444_v14  ;;  %2442 = vmatmul.msk.f32.gmra.mxu2 %vm1779_vm9, %v1832_v31  ;;  %v1718_v48 = vsel %vm1713_vm8, %v3784_v56, %v1300_v0 }
 0x2d8   : > { %1792 = vst.msk [vmem:[#allocation2 + $0x60] sm:$0xff] %vm1779_vm9, %v1759_v60  ;;  %v1840_v12 = vld [vmem:[#allocation2 + $0xe0] sm:$0xff] }
 0x2d9   : > { %2450 = vmatmul.msk.f32.gmra.mxu3 %vm1779_vm9, %v1840_v12 }
 0x2dd   : > { %v1428_v11 = vpop.permute.xlu1 %1427  ;;  %v1430_v27 = vpop.permute.xlu2 %1429 }
 0x2de   : > { %v1751_v7 = vsel %vm1746_vm7, %v1718_v48, %v1428_v11  ;;  %v1222_v35 = vpop.permute.xlu0 %1221 }
 0x2df   : > { %1784 = vst.msk [vmem:[#allocation2 + $0x20] sm:$0xff] %vm1779_vm9, %v1751_v7  ;;  %v1824_v17 = vld [vmem:[#allocation2 + $0x60] sm:$0xff]  ;;  %v1710_v26 = vsel %vm1680_vm5, %v3833_v32, %v1222_v35 }
 0x2e0   : > { %2434 = vmatmul.msk.f32.gmra.mxu1 %vm1779_vm9, %v1824_v17 }
 0x2e5   : > { %v1350_v28 = vpop.permute.xlu1 %1349  ;;  %v1352_v53 = vpop.permute.xlu2 %1351 }
 0x2e6   : > { %v1334_v34 = vpop.permute.xlu0 %1333  ;;  %v1816_v51 = vld [vmem:[#allocation2 + $0x20] sm:$0xff]  ;;  %v1743_v38 = vsel %vm1713_vm8, %v1710_v26, %v1350_v28 }
 0x2e7   : > { %v1735_v6 = vsel %vm1713_vm8, %v1702_v45, %v1334_v34  ;;  %2426 = vmatmul.msk.f32.gmra.mxu0 %vm1779_vm9, %v1816_v51 }
 0x2e8   : > { %v1768_v56 = vsel %vm1746_vm7, %v1735_v6, %v1462_v33 }
 0x2e9   : > { %1801 = vst.msk [vmem:[#allocation2 + $0xa8] sm:$0xff] %vm1779_vm9, %v1768_v56 }
 0x2ed   : > { %v1302_v63 = vpop.permute.xlu1 %1301  ;;  %v1304_v22 = vpop.permute.xlu2 %1303 }
 0x2ee   : > { %v1719_v21 = vsel %vm1713_vm8, %v3927_v30, %v1302_v63  ;;  %v1478_v57 = vpop.permute.xlu0 %1477  ;;  %v1720_v63 = vsel %vm1713_vm8, %v3924_v36, %v1304_v22 }
 0x2ef   : > { %v1752_v44 = vsel %vm1746_vm7, %v1719_v21, %v1430_v27  ;;  %v1776_v42 = vsel %vm1746_vm7, %v1743_v38, %v1478_v57 }
 0x2f0   : > { %1785 = vst.msk [vmem:[#allocation2 + $0x28] sm:$0xff] %vm1779_vm9, %v1752_v44  ;;  %v1833_v15 = vld [vmem:[#allocation2 + $0xa8] sm:$0xff] }
 0x2f1   : > { %1809 = vst.msk [vmem:[#allocation2 + $0xe8] sm:$0xff] %vm1779_vm9, %v1776_v42  ;;  %2443 = vmatmul.msk.f32.gmra.mxu2 %vm1779_vm9, %v1833_v15 }
 0x2f2   : > { %v2042_v32 = vpop.f32.mrf.mxu3 }
 0x2f3   : > { %v2018_v30 = vpop.f32.mrf.mxu2  ;;  %v2043_v8 = vadd.f32 %v4253_v39, %v2042_v32 }
 0x2f4   : > { %v2019_v54 = vadd.f32 %v4253_v39, %v2018_v30 }
 0x2f5   : > { %v2090_v19 = vmax.f32 %v2043_v8, 0.0  ;;  %v1224_v50 = vpop.permute.xlu1 %1223 }
 0x2f6   : > { %v2082_v18 = vmax.f32 %v2019_v54, 0.0  ;;  %v1208_v5 = vpop.permute.xlu0 %1207  ;;  %v1711_v14 = vsel %vm1680_vm5, %v3714_v43, %v1224_v50 }
 0x2f7   : > { %2122 = vst [vmem:[%s4263_s20 + $0xc0] sm:$0xff] %v2090_v19  ;;  %v1817_v13 = vld [vmem:[#allocation2 + $0x28] sm:$0xff]  ;;  %v1703_v1 = vsel %vm1680_vm5, %v3755_v47, %v1208_v5  ;;  %v1744_v52 = vsel %vm1713_vm8, %v1711_v14, %v1352_v53  ;;  %v1226_v47 = vpop.permute.xlu2 %1225 }
 0x2f8   : > { %2114 = vst [vmem:[%s4263_s20 + $0x80] sm:$0xff] %v2082_v18  ;;  %v1841_v40 = vld [vmem:[#allocation2 + $0xe8] sm:$0xff]  ;;  %2427 = vmatmul.msk.f32.gmra.mxu0 %vm1779_vm9, %v1817_v13  ;;  %v1712_v36 = vsel %vm1680_vm5, %v3873_v9, %v1226_v47 }
 0x2f9   : > { %2451 = vmatmul.msk.f32.gmra.mxu3 %vm1779_vm9, %v1841_v40 }
 0x2fc   : > { %v1994_v61 = vpop.f32.mrf.mxu1 }
 0x2fd   : > { %v1970_v25 = vpop.f32.mrf.mxu0  ;;  %v1995_v46 = vadd.f32 %v4253_v39, %v1994_v61  ;;  %v1336_v58 = vpop.permute.xlu1 %1335 }
 0x2fe   : > { %v1971_v20 = vadd.f32 %v4253_v39, %v1970_v25  ;;  %v1446_v29 = vpop.permute.xlu0 %1445  ;;  %v1736_v16 = vsel %vm1713_vm8, %v1703_v1, %v1336_v58 }
 0x2ff   : > { %v2074_v10 = vmax.f32 %v1995_v46, 0.0  ;;  %v1760_v49 = vsel %vm1746_vm7, %v1727_v23, %v1446_v29  ;;  %v1338_v51 = vpop.permute.xlu2 %1337 }
 0x300   : > { %v2066_v24 = vmax.f32 %v1971_v20, 0.0  ;;  %1793 = vst.msk [vmem:[#allocation2 + $0x68] sm:$0xff] %vm1779_vm9, %v1760_v49 }
 0x301   : > { %2106 = vst [vmem:[%s4263_s20 + $0x40] sm:$0xff] %v2074_v10 }
 0x302   : > { %2098 = vst [vmem:[%s4263_s20] sm:$0xff] %v2066_v24 }
 0x305   : > { %v1480_v62 = vpop.permute.xlu1 %1479 }
 0x306   : > { %v1777_v3 = vsel %vm1746_vm7, %v1744_v52, %v1480_v62  ;;  %v1464_v2 = vpop.permute.xlu0 %1463 }
 0x307   : > { %1810 = vst.msk [vmem:[#allocation2 + $0xf0] sm:$0xff] %vm1779_vm9, %v1777_v3  ;;  %v1769_v0 = vsel %vm1746_vm7, %v1736_v16, %v1464_v2  ;;  %v1825_v31 = vld [vmem:[#allocation2 + $0x68] sm:$0xff]  ;;  %v1482_v42 = vpop.permute.xlu2 %1481 }
 0x308   : > { %1802 = vst.msk [vmem:[#allocation2 + $0xb0] sm:$0xff] %vm1779_vm9, %v1769_v0  ;;  %2435 = vmatmul.msk.f32.gmra.mxu1 %vm1779_vm9, %v1825_v31 }
 0x30a   : > { %v2021_v43 = vpop.f32.mrf.mxu2 }
 0x30b   : > { %v2022_v60 = vadd.f32 %v4253_v39, %v2021_v43 }
 0x30c   : > { %v2045_v12 = vpop.f32.mrf.mxu3 }
 0x30d   : > { %v2083_v33 = vmax.f32 %v2022_v60, 0.0  ;;  %v2046_v48 = vadd.f32 %v4253_v39, %v2045_v12  ;;  %v1210_v11 = vpop.permute.xlu1 %1209  ;;  %v1997_v7 = vpop.f32.mrf.mxu1 }
 0x30e   : > { %v1320_v35 = vpop.permute.xlu0 %1319  ;;  %v1998_v17 = vadd.f32 %v4253_v39, %v1997_v7  ;;  %v1842_v4 = vld [vmem:[#allocation2 + $0xf0] sm:$0xff] }
 0x30f   : > { %2115 = vst [vmem:[%s4263_s20 + $0x88] sm:$0xff] %v2083_v33  ;;  %v2091_v28 = vmax.f32 %v2046_v48, 0.0  ;;  %v1834_v45 = vld [vmem:[#allocation2 + $0xb0] sm:$0xff]  ;;  %2452 = vmatmul.msk.f32.gmra.mxu3 %vm1779_vm9, %v1842_v4  ;;  %v1728_v56 = vsel %vm1713_vm8, %v4006_v59, %v1320_v35  ;;  %v1704_v59 = vsel %vm1680_vm5, %v3751_v55, %v1210_v11  ;;  %v1434_v53 = vpop.permute.xlu2 %1433 }
 0x310   : > { %v2075_v34 = vmax.f32 %v1998_v17, 0.0  ;;  %2444 = vmatmul.msk.f32.gmra.mxu2 %vm1779_vm9, %v1834_v45  ;;  %v1737_v15 = vsel %vm1713_vm8, %v1704_v59, %v1338_v51 }
 0x311   : > { %2123 = vst [vmem:[%s4263_s20 + $0xc8] sm:$0xff] %v2091_v28 }
 0x312   : > { %2107 = vst [vmem:[%s4263_s20 + $0x48] sm:$0xff] %v2075_v34 }
 0x314   : > { %v1973_v6 = vpop.f32.mrf.mxu0 }
 0x315   : > { %v1974_v27 = vadd.f32 %v4253_v39, %v1973_v6  ;;  %v1448_v26 = vpop.permute.xlu1 %1447 }
 0x316   : > { %v1761_v38 = vsel %vm1746_vm7, %v1728_v56, %v1448_v26  ;;  %v1432_v21 = vpop.permute.xlu0 %1431 }
 0x317   : > { %v2067_v57 = vmax.f32 %v1974_v27, 0.0  ;;  %1794 = vst.msk [vmem:[#allocation2 + $0x70] sm:$0xff] %vm1779_vm9, %v1761_v38  ;;  %v1753_v44 = vsel %vm1746_vm7, %v1720_v63, %v1432_v21 }
 0x318   : > { %1786 = vst.msk [vmem:[#allocation2 + $0x30] sm:$0xff] %vm1779_vm9, %v1753_v44 }
 0x319   : > { %2099 = vst [vmem:[%s4263_s20 + $0x8] sm:$0xff] %v2067_v57 }
 0x31d   : > { %v1466_v32 = vpop.permute.xlu1 %1465 }
 0x31e   : > { %v1770_v30 = vsel %vm1746_vm7, %v1737_v15, %v1466_v32  ;;  %v1354_v8 = vpop.permute.xlu0 %1353  ;;  %v1826_v54 = vld [vmem:[#allocation2 + $0x70] sm:$0xff] }
 0x31f   : > { %1803 = vst.msk [vmem:[#allocation2 + $0xb8] sm:$0xff] %vm1779_vm9, %v1770_v30  ;;  %v1745_v19 = vsel %vm1713_vm8, %v1712_v36, %v1354_v8  ;;  %v1818_v50 = vld [vmem:[#allocation2 + $0x30] sm:$0xff]  ;;  %2436 = vmatmul.msk.f32.gmra.mxu1 %vm1779_vm9, %v1826_v54 }
 0x320   : > { %v1778_v55 = vsel %vm1746_vm7, %v1745_v19, %v1482_v42  ;;  %2428 = vmatmul.msk.f32.gmra.mxu0 %vm1779_vm9, %v1818_v50 }
 0x321   : > { %1811 = vst.msk [vmem:[#allocation2 + $0xf8] sm:$0xff] %vm1779_vm9, %v1778_v55 }
 0x324   : > { %v2024_v9 = vpop.f32.mrf.mxu2 }
 0x325   : > { %v2025_v18 = vadd.f32 %v4253_v39, %v2024_v9  ;;  %v1976_v5 = vpop.f32.mrf.mxu0  ;;  %v1322_v29 = vpop.permute.xlu1 %1321 }
 0x326   : > { %v1306_v13 = vpop.permute.xlu0 %1305  ;;  %v1977_v40 = vadd.f32 %v4253_v39, %v1976_v5  ;;  %v1835_v61 = vld [vmem:[#allocation2 + $0xb8] sm:$0xff] }
 0x327   : > { %v2084_v25 = vmax.f32 %v2025_v18, 0.0  ;;  %v1721_v46 = vsel %vm1713_vm8, %v3830_v41, %v1306_v13  ;;  %2445 = vmatmul.msk.f32.gmra.mxu2 %vm1779_vm9, %v1835_v61  ;;  %v1729_v41 = vsel %vm1713_vm8, %v4002_v37, %v1322_v29 }
 0x328   : > { %v2068_v58 = vmax.f32 %v1977_v40, 0.0  ;;  %v1754_v23 = vsel %vm1746_vm7, %v1721_v46, %v1434_v53  ;;  %v1843_v20 = vld [vmem:[#allocation2 + $0xf8] sm:$0xff] }
 0x329   : > { %2116 = vst [vmem:[%s4263_s20 + $0x90] sm:$0xff] %v2084_v25  ;;  %2453 = vmatmul.msk.f32.gmra.mxu3 %vm1779_vm9, %v1843_v20 }
 0x32a   : > { %2100 = vst [vmem:[%s4263_s20 + $0x10] sm:$0xff] %v2068_v58 }
 0x32b   : > { %1787 = vst.msk [vmem:[#allocation2 + $0x38] sm:$0xff] %vm1779_vm9, %v1754_v23 }
 0x32c   : > { %v2048_v10 = vpop.f32.mrf.mxu3 }
 0x32d   : > { %v2049_v49 = vadd.f32 %v4253_v39, %v2048_v10 }
 0x32e   : > { %v1450_v24 = vpop.permute.xlu0 %1449 }
 0x32f   : > { %v2092_v22 = vmax.f32 %v2049_v49, 0.0  ;;  %v1762_v14 = vsel %vm1746_vm7, %v1729_v41, %v1450_v24 }
 0x330   : > { %1795 = vst.msk [vmem:[#allocation2 + $0x78] sm:$0xff] %vm1779_vm9, %v1762_v14 }
 0x331   : > { %2124 = vst [vmem:[%s4263_s20 + $0xd0] sm:$0xff] %v2092_v22 }
 0x332   : > { %v1819_v1 = vld [vmem:[#allocation2 + $0x38] sm:$0xff] }
 0x333   : > { %2429 = vmatmul.msk.f32.gmra.mxu0 %vm1779_vm9, %v1819_v1 }
 0x335   : > { %v2000_v62 = vpop.f32.mrf.mxu1 }
 0x336   : > { %v2001_v52 = vadd.f32 %v4253_v39, %v2000_v62 }
 0x337   : > { %v1827_v16 = vld [vmem:[#allocation2 + $0x78] sm:$0xff] }
 0x338   : > { %v2076_v3 = vmax.f32 %v2001_v52, 0.0  ;;  %2437 = vmatmul.msk.f32.gmra.mxu1 %vm1779_vm9, %v1827_v16 }
 0x33a   : > { %2108 = vst [vmem:[%s4263_s20 + $0x50] sm:$0xff] %v2076_v3 }
 0x342   : > { %v2051_v37 = vpop.f32.mrf.mxu3 }
 0x343   : > { %v2027_v2 = vpop.f32.mrf.mxu2  ;;  %v2052_v0 = vadd.f32 %v4253_v39, %v2051_v37 }
 0x344   : > { %v2028_v31 = vadd.f32 %v4253_v39, %v2027_v2 }
 0x345   : > { %v2093_v43 = vmax.f32 %v2052_v0, 0.0 }
 0x346   : > { %v2085_v47 = vmax.f32 %v2028_v31, 0.0 }
 0x347   : > { %2125 = vst [vmem:[%s4263_s20 + $0xd8] sm:$0xff] %v2093_v43 }
 0x348   : > { %2117 = vst [vmem:[%s4263_s20 + $0x98] sm:$0xff] %v2085_v47 }
 0x34c   : > { %v2003_v60 = vpop.f32.mrf.mxu1 }
 0x34d   : > { %v1979_v12 = vpop.f32.mrf.mxu0  ;;  %v2004_v33 = vadd.f32 %v4253_v39, %v2003_v60 }
 0x34e   : > { %v1980_v48 = vadd.f32 %v4253_v39, %v1979_v12 }
 0x34f   : > { %v2077_v11 = vmax.f32 %v2004_v33, 0.0 }
 0x350   : > { %v2069_v7 = vmax.f32 %v1980_v48, 0.0 }
 0x351   : > { %2109 = vst [vmem:[%s4263_s20 + $0x58] sm:$0xff] %v2077_v11 }
 0x352   : > { %2101 = vst [vmem:[%s4263_s20 + $0x18] sm:$0xff] %v2069_v7 }
 0x35a   : > { %v2030_v35 = vpop.f32.mrf.mxu2 }
 0x35b   : > { %v2031_v17 = vadd.f32 %v4253_v39, %v2030_v35 }
 0x35c   : > { %v2054_v4 = vpop.f32.mrf.mxu3 }
 0x35d   : > { %v2086_v28 = vmax.f32 %v2031_v17, 0.0  ;;  %v2055_v45 = vadd.f32 %v4253_v39, %v2054_v4  ;;  %v2006_v34 = vpop.f32.mrf.mxu1 }
 0x35e   : > { %v2007_v51 = vadd.f32 %v4253_v39, %v2006_v34 }
 0x35f   : > { %2118 = vst [vmem:[%s4263_s20 + $0xa0] sm:$0xff] %v2086_v28  ;;  %v2094_v6 = vmax.f32 %v2055_v45, 0.0 }
 0x360   : > { %v2078_v56 = vmax.f32 %v2007_v51, 0.0 }
 0x361   : > { %2126 = vst [vmem:[%s4263_s20 + $0xe0] sm:$0xff] %v2094_v6 }
 0x362   : > { %2110 = vst [vmem:[%s4263_s20 + $0x60] sm:$0xff] %v2078_v56 }
 0x364   : > { %v1982_v27 = vpop.f32.mrf.mxu0 }
 0x365   : > { %v1983_v26 = vadd.f32 %v4253_v39, %v1982_v27 }
 0x367   : > { %v2070_v63 = vmax.f32 %v1983_v26, 0.0 }
 0x369   : > { %2102 = vst [vmem:[%s4263_s20 + $0x20] sm:$0xff] %v2070_v63 }
 0x374   : > { %v2033_v38 = vpop.f32.mrf.mxu2 }
 0x375   : > { %v2034_v21 = vadd.f32 %v4253_v39, %v2033_v38  ;;  %v1985_v57 = vpop.f32.mrf.mxu0 }
 0x376   : > { %v1986_v44 = vadd.f32 %v4253_v39, %v1985_v57 }
 0x377   : > { %v2087_v59 = vmax.f32 %v2034_v21, 0.0 }
 0x378   : > { %v2071_v42 = vmax.f32 %v1986_v44, 0.0 }
 0x379   : > { %2119 = vst [vmem:[%s4263_s20 + $0xa8] sm:$0xff] %v2087_v59 }
 0x37a   : > { %2103 = vst [vmem:[%s4263_s20 + $0x28] sm:$0xff] %v2071_v42 }
 0x37c   : > { %v2057_v15 = vpop.f32.mrf.mxu3 }
 0x37d   : > { %v2058_v32 = vadd.f32 %v4253_v39, %v2057_v15 }
 0x37f   : > { %v2095_v36 = vmax.f32 %v2058_v32, 0.0 }
 0x381   : > { %2127 = vst [vmem:[%s4263_s20 + $0xe8] sm:$0xff] %v2095_v36 }
 0x385   : > { %v2009_v30 = vpop.f32.mrf.mxu1 }
 0x386   : > { %v2010_v8 = vadd.f32 %v4253_v39, %v2009_v30 }
 0x388   : > { %v2079_v54 = vmax.f32 %v2010_v8, 0.0 }
 0x38a   : > { %2111 = vst [vmem:[%s4263_s20 + $0x68] sm:$0xff] %v2079_v54 }
 0x392   : > { %v2060_v19 = vpop.f32.mrf.mxu3 }
 0x393   : > { %v2036_v50 = vpop.f32.mrf.mxu2  ;;  %v2061_v55 = vadd.f32 %v4253_v39, %v2060_v19 }
 0x394   : > { %v2037_v9 = vadd.f32 %v4253_v39, %v2036_v50 }
 0x395   : > { %v2096_v18 = vmax.f32 %v2061_v55, 0.0 }
 0x396   : > { %v2088_v5 = vmax.f32 %v2037_v9, 0.0 }
 0x397   : > { %2128 = vst [vmem:[%s4263_s20 + $0xf0] sm:$0xff] %v2096_v18 }
 0x398   : > { %2120 = vst [vmem:[%s4263_s20 + $0xb0] sm:$0xff] %v2088_v5 }
 0x39c   : > { %v2012_v53 = vpop.f32.mrf.mxu1 }
 0x39d   : > { %v1988_v13 = vpop.f32.mrf.mxu0  ;;  %v2013_v40 = vadd.f32 %v4253_v39, %v2012_v53 }
 0x39e   : > { %v1989_v61 = vadd.f32 %v4253_v39, %v1988_v13 }
 0x39f   : > { %v2080_v25 = vmax.f32 %v2013_v40, 0.0 }
 0x3a0   : > { %v2072_v46 = vmax.f32 %v1989_v61, 0.0 }
 0x3a1   : > { %2112 = vst [vmem:[%s4263_s20 + $0x70] sm:$0xff] %v2080_v25 }
 0x3a2   : > { %2104 = vst [vmem:[%s4263_s20 + $0x30] sm:$0xff] %v2072_v46 }
 0x3aa   : > { %v2039_v58 = vpop.f32.mrf.mxu2 }
 0x3ab   : > { %v2040_v23 = vadd.f32 %v4253_v39, %v2039_v58 }
 0x3ac   : > { %v2063_v20 = vpop.f32.mrf.mxu3 }
 0x3ad   : > { %v2089_v29 = vmax.f32 %v2040_v23, 0.0  ;;  %v2064_v10 = vadd.f32 %v4253_v39, %v2063_v20 }
 0x3af   : > { %2121 = vst [vmem:[%s4263_s20 + $0xb8] sm:$0xff] %v2089_v29  ;;  %v2097_v49 = vmax.f32 %v2064_v10, 0.0 }
 0x3b0   : > { %v1991_v41 = vpop.f32.mrf.mxu0 }
 0x3b1   : > { %2129 = vst [vmem:[%s4263_s20 + $0xf8] sm:$0xff] %v2097_v49  ;;  %v1992_v24 = vadd.f32 %v4253_v39, %v1991_v41 }
 0x3b3   : > { %v2073_v22 = vmax.f32 %v1992_v24, 0.0 }
 0x3b5   : > { %2105 = vst [vmem:[%s4263_s20 + $0x38] sm:$0xff] %v2073_v22  ;;  %v2015_v14 = vpop.f32.mrf.mxu1 }
 0x3b6   : > { %v2016_v1 = vadd.f32 %v4253_v39, %v2015_v14 }
 0x3b8   : > { %v2081_v62 = vmax.f32 %v2016_v1, 0.0 }
 0x3ba   : > { %2113 = vst [vmem:[%s4263_s20 + $0x78] sm:$0xff] %v2081_v62 }
 0x3bb PF: > { %s13_s14 = sadd.s32 1, %s2532_s14   ;;  %s4673_s12 = smov %s2528_s13 }
 0x3bc   : > { %p10_p5 = scmp.ge.s32.totalorder %s13_s14, 4   ;;  %s4674_s13 = smov %s4676_s15 }
 0x3be   :  { %12 = sbr.rel (!%p10_p5) target bundleno = 2 (0x2), region = 65 }

</bundles_post_ra>
